<compile_context>
chip_gen: v5e
topology: v5e:2x2
jax: 0.10.0
libtpu: 0.0.40
codegen_flags: <defaults>
</compile_context>

<pallas_src>
import jax
import jax.numpy as jnp
from jax.experimental import pallas as pl
from jax.experimental.pallas import tpu as pltpu


def _round_up(n: int, m: int) -> int:
    return ((n + m - 1) // m) * m


# ----------------------------- kernels -----------------------------

def _proj_relu_classifier_kernel(x_ref, w1_ref, b1_ref, w2_ref, b2_ref,
                                 logits_ref, feat_ref):
    # In-kernel cast: x streams from HBM in its original dtype (f32); the VPU cast to the
    # matmul dtype (bf16 fast path) is free under the MXU and avoids a wrapper cast pass.
    x = x_ref[...].astype(w1_ref.dtype)
    feat = jnp.dot(x, w1_ref[...], preferred_element_type=jnp.float32) + b1_ref[...]
    feat_ref[...] = feat.astype(feat_ref.dtype)
    # TODO(synk): nn.Dropout(0.2) is identity in eval mode; training-mode dropout
    # (pltpu.prng_random_bits masking) is not implemented.
    h = jnp.maximum(feat, 0.0)  # ReLU
    # Classifier on the lane-dense (C padded to 128) output tile -> full vst stores.
    logits_ref[...] = (jnp.dot(h.astype(w2_ref.dtype), w2_ref[...],
                               preferred_element_type=jnp.float32)
                       + b2_ref[...]).astype(logits_ref.dtype)


def _proj_only_kernel(x_ref, w1_ref, b1_ref, feat_ref):
    # frame=False path: only the projection is needed per row; pooling + the tiny pooled
    # classifier run outside the kernel.
    x = x_ref[...].astype(w1_ref.dtype)
    feat_ref[...] = (jnp.dot(x, w1_ref[...], preferred_element_type=jnp.float32)
                     + b1_ref[...]).astype(feat_ref.dtype)


# ----------------------------- wrapper -----------------------------

def prepare_params(w1, b1, w2, b2, *, use_bf16=False):
    """One-time parameter prep (hoisted out of the forward pass):
    dtype casts + lane-dense zero-padding of the classifier to 128 output columns."""
    D, H = w1.shape
    C = w2.shape[1]
    mm_dtype = jnp.bfloat16 if use_bf16 else jnp.float32
    C_pad = _round_up(max(C, 128), 128)   # 128 is the lane-dense minimum; do NOT pad wider
    w1c = w1.astype(mm_dtype)
    b1r = b1.reshape(1, H).astype(jnp.float32)
    w2p = jnp.zeros((H, C_pad), mm_dtype).at[:, :C].set(w2.astype(mm_dtype))
    b2p = jnp.zeros((1, C_pad), jnp.float32).at[:, :C].set(b2.astype(jnp.float32))
    return {
        "w1": w1c, "b1": b1r, "w2p": w2p, "b2p": b2p,
        "w2": w2.astype(jnp.float32), "b2": b2.astype(jnp.float32),
    }


def backend_forward(x, params, *, frame=True, feature_dtype=jnp.float32, tile_m=1024):
    """x: (B, S, feature_dim).  params: output of prepare_params.
       Returns (logits, feature) matching the PyTorch module."""
    B, S, D = x.shape
    w1, b1 = params["w1"], params["b1"]
    w2p, b2p = params["w2p"], params["b2p"]
    H = w1.shape[1]
    C_pad = w2p.shape[1]
    C = params["w2"].shape[1]
    M = B * S

    x2d = x.reshape(M, D)                     # reshape only: no dtype cast, no jnp.pad

    feat_dt = jnp.dtype(feature_dtype) if frame else jnp.dtype(jnp.float32)
    # (sublane, lane) block constraint: 8 rows for 32-bit outputs, 16 for bf16 outputs.
    min_tm = 8 if feat_dt.itemsize >= 4 else 16

    TM = _round_up(min(tile_m, M), min_tm)
    # v7x megacore: ensure >= 2 "parallel" row tiles whenever M allows it.
    if M > min_tm and pl.cdiv(M, TM) < 2:
        TM = _round_up(pl.cdiv(M, 2), min_tm)
    grid = (pl.cdiv(M, TM),)                  # ragged last tile handled by Pallas (no pad)

    # VMEM budget derived from TM: double-buffered streamed tiles + resident weights.
    mm_bytes = jnp.dtype(w1.dtype).itemsize
    tile_bytes = 2 * TM * (D * 4 + H * feat_dt.itemsize + (C_pad * 4 if frame else 0))
    weight_bytes = 2 * (D * H * mm_bytes + H * 4)
    if frame:
        weight_bytes += 2 * (H * C_pad * mm_bytes + C_pad * 4)
    vmem_bytes = int(min(max(tile_bytes + weight_bytes + (4 << 20), 32 << 20), 96 << 20))

    cparams = pltpu.CompilerParams(
        dimension_semantics=("parallel",),    # shard row tiles across v7x TensorCores
        vmem_limit_bytes=vmem_bytes,
    )

    if frame:
        logits2d, feat2d = pl.pallas_call(
            _proj_relu_classifier_kernel,
            out_shape=(
                jax.ShapeDtypeStruct((M, C_pad), jnp.float32),
                jax.ShapeDtypeStruct((M, H), feat_dt),
            ),
            grid_spec=pl.GridSpec(
                grid=grid,
                in_specs=[
                    pl.BlockSpec((TM, D), lambda i: (i, 0)),      # x tile (streamed)
                    pl.BlockSpec((D, H), lambda i: (0, 0)),       # W1 (VMEM-resident)
                    pl.BlockSpec((1, H), lambda i: (0, 0)),       # b1 (VMEM-resident)
                    pl.BlockSpec((H, C_pad), lambda i: (0, 0)),   # W2 padded (resident)
                    pl.BlockSpec((1, C_pad), lambda i: (0, 0)),   # b2 padded (resident)
                ],
                out_specs=[
                    pl.BlockSpec((TM, C_pad), lambda i: (i, 0)),  # logits (lane-dense)
                    pl.BlockSpec((TM, H), lambda i: (i, 0)),      # feature
                ],
            ),
            compiler_params=cparams,
        )(x2d, w1, b1, w2p, b2p)
        feature = feat2d.reshape(B, S, H)
        logits = logits2d[:, :C].reshape(B, S, C)
        return logits, feature

    # frame == False: proj-only kernel (no classifier FLOPs, no W2/b2 residency, no
    # discarded logits writeback), then PyTorch-order pooling over seq and the tiny
    # pooled classifier in plain JAX.
    feat2d = pl.pallas_call(
        _proj_only_kernel,
        out_shape=jax.ShapeDtypeStruct((M, H), jnp.float32),
        grid_spec=pl.GridSpec(
            grid=grid,
            in_specs=[
                pl.BlockSpec((TM, D), lambda i: (i, 0)),
                pl.BlockSpec((D, H), lambda i: (0, 0)),
                pl.BlockSpec((1, H), lambda i: (0, 0)),
            ],
            out_specs=pl.BlockSpec((TM, H), lambda i: (i, 0)),
        ),
        compiler_params=cparams,
    )(x2d, w1, b1)
    pooled = feat2d.reshape(B, S, H).mean(axis=1)                       # (B, H) f32
    logits = jnp.maximum(pooled, 0.0) @ params["w2"] + params["b2"]     # (B, C)
    return logits, pooled.astype(feature_dtype)


def init_params(key, feature_dim=768, hidden_dim=512, class_size=10):
    # Deterministic init mimicking PyTorch nn.Linear default (uniform +/- 1/sqrt(fan_in)).
    k1, k2, k3, k4 = jax.random.split(key, 4)
    lim1 = 1.0 / jnp.sqrt(feature_dim)
    lim2 = 1.0 / jnp.sqrt(hidden_dim)
    w1 = jax.random.uniform(k1, (feature_dim, hidden_dim), jnp.float32, -lim1, lim1)
    b1 = jax.random.uniform(k2, (hidden_dim,), jnp.float32, -lim1, lim1)
    w2 = jax.random.uniform(k3, (hidden_dim, class_size), jnp.float32, -lim2, lim2)
    b2 = jax.random.uniform(k4, (class_size,), jnp.float32, -lim2, lim2)
    return w1, b1, w2, b2


if __name__ == "__main__":
    key = jax.random.PRNGKey(0)
    kx, kp, kx2 = jax.random.split(key, 3)

    feature_dim, hidden_dim, class_size = 768, 512, 10   # encoder_size=12 -> 768
    w1, b1, w2, b2 = init_params(kp, feature_dim, hidden_dim, class_size)

    params_f32 = prepare_params(w1, b1, w2, b2, use_bf16=False)
    params_bf16 = prepare_params(w1, b1, w2, b2, use_bf16=True)

    # --- frame=True, f32 path (M=16 -> two parallel row tiles) ---
    B, S = 2, 8
    x = jax.random.normal(kx, (B, S, feature_dim), jnp.float32)
    logits, feature = backend_forward(x, params_f32, frame=True)
    jax.block_until_ready((logits, feature))

    feat_ref = x @ w1 + b1
    logits_ref = jnp.maximum(feat_ref, 0.0) @ w2 + b2
    assert logits.shape == (B, S, class_size)
    assert feature.shape == (B, S, hidden_dim)
    assert jnp.allclose(feature, feat_ref, atol=1e-4, rtol=1e-4)
    assert jnp.allclose(logits, logits_ref, atol=1e-4, rtol=1e-4)

    # --- ragged row count (M=15): no jnp.pad, Pallas handles the partial last tile ---
    B2, S2 = 3, 5
    x2 = jax.random.normal(kx2, (B2, S2, feature_dim), jnp.float32)
    logits2, feature2 = backend_forward(x2, params_f32, frame=True)
    jax.block_until_ready((logits2, feature2))
    feat_ref2 = x2 @ w1 + b1
    logits_ref2 = jnp.maximum(feat_ref2, 0.0) @ w2 + b2
    assert jnp.allclose(feature2, feat_ref2, atol=1e-4, rtol=1e-4)
    assert jnp.allclose(logits2, logits_ref2, atol=1e-4, rtol=1e-4)

    # --- frame=False: proj-only kernel, pool over seq, pooled classifier in JAX ---
    logits3, feature3 = backend_forward(x, params_f32, frame=False)
    jax.block_until_ready((logits3, feature3))
    pooled_ref = feat_ref.mean(axis=1)
    logits3_ref = jnp.maximum(pooled_ref, 0.0) @ w2 + b2
    assert logits3.shape == (B, class_size)
    assert feature3.shape == (B, hidden_dim)
    assert jnp.allclose(feature3, pooled_ref, atol=1e-4, rtol=1e-4)
    assert jnp.allclose(logits3, logits3_ref, atol=1e-4, rtol=1e-4)

    # --- bf16 fast path: bf16 MXU inputs (in-kernel cast) + bf16 feature writeback ---
    logits4, feature4 = backend_forward(x, params_bf16, frame=True,
                                        feature_dtype=jnp.bfloat16)
    jax.block_until_ready((logits4, feature4))
    assert jnp.allclose(feature4.astype(jnp.float32), feat_ref, atol=1e-1, rtol=1e-1)
    assert jnp.allclose(logits4, logits_ref, atol=1e-1, rtol=1e-1)

    print("KERNEL_OK")
</pallas_src>

<mosaic_0001>
module attributes {stable_mosaic.version = 11 : i64} {
  func.func @_proj_relu_classifier_kernel(%arg0: i32, %arg1: memref<8x768xf32, #tpu.memory_space<vmem>>, %arg2: memref<768x512xf32, #tpu.memory_space<vmem>>, %arg3: memref<1x512xf32, #tpu.memory_space<vmem>>, %arg4: memref<512x128xf32, #tpu.memory_space<vmem>>, %arg5: memref<1x128xf32, #tpu.memory_space<vmem>>, %arg6: memref<8x128xf32, #tpu.memory_space<vmem>>, %arg7: memref<8x512xf32, #tpu.memory_space<vmem>>) attributes {dimension_semantics = [#tpu.dimension_semantics<parallel>], iteration_bounds = array<i64: 2>, scalar_prefetch = 0 : i64, scratch_operands = 0 : i64, tpu.core_type = #tpu.core_type<tc>, window_params = [{transform_indices = @transform_0, window_bounds = array<i64: 8, 768>}, {pipeline_mode = #tpu.pipeline_mode<synchronous>, transform_indices = @transform_1, window_bounds = array<i64: 768, 512>}, {pipeline_mode = #tpu.pipeline_mode<synchronous>, transform_indices = @transform_2, window_bounds = array<i64: 1, 512>}, {pipeline_mode = #tpu.pipeline_mode<synchronous>, transform_indices = @transform_3, window_bounds = array<i64: 512, 128>}, {pipeline_mode = #tpu.pipeline_mode<synchronous>, transform_indices = @transform_4, window_bounds = array<i64: 1, 128>}, {transform_indices = @transform_5, window_bounds = array<i64: 8, 128>}, {transform_indices = @transform_6, window_bounds = array<i64: 8, 512>}]} {
    %c0 = arith.constant 0 : index
    %c0_0 = arith.constant 0 : index
    %0 = vector.load %arg1[%c0, %c0_0] : memref<8x768xf32, #tpu.memory_space<vmem>>, vector<8x768xf32>
    %c0_1 = arith.constant 0 : index
    %c0_2 = arith.constant 0 : index
    %1 = vector.load %arg2[%c0_1, %c0_2] : memref<768x512xf32, #tpu.memory_space<vmem>>, vector<768x512xf32>
    %cst = arith.constant dense<0.000000e+00> : vector<8x512xf32>
    %2 = tpu.matmul %0, %1, %cst {dimension_numbers = #tpu.dot_dimension_numbers<[1], [0], [0], [1], [0, 0, 1, 1], [], []>} : vector<8x768xf32>, vector<768x512xf32>, vector<8x512xf32> -> vector<8x512xf32>
    %c0_3 = arith.constant 0 : index
    %c0_4 = arith.constant 0 : index
    %3 = vector.load %arg3[%c0_3, %c0_4] : memref<1x512xf32, #tpu.memory_space<vmem>>, vector<1x512xf32>
    %4 = vector.broadcast %3 : vector<1x512xf32> to vector<8x512xf32>
    %5 = arith.addf %2, %4 : vector<8x512xf32>
    %c0_5 = arith.constant 0 : index
    %c0_6 = arith.constant 0 : index
    %6 = vector.load %arg7[%c0_5, %c0_6] : memref<8x512xf32, #tpu.memory_space<vmem>>, vector<8x512xf32>
    tpu.vector_store %arg7[%c0_5, %c0_6], %5 {strides = array<i32>} : memref<8x512xf32, #tpu.memory_space<vmem>>, vector<8x512xf32>,
    %cst_7 = arith.constant 0.000000e+00 : f32
    %7 = vector.broadcast %cst_7 : f32 to vector<8x512xf32>
    %8 = arith.maximumf %5, %7 : vector<8x512xf32>
    %c0_8 = arith.constant 0 : index
    %c0_9 = arith.constant 0 : index
    %9 = vector.load %arg4[%c0_8, %c0_9] : memref<512x128xf32, #tpu.memory_space<vmem>>, vector<512x128xf32>
    %cst_10 = arith.constant dense<0.000000e+00> : vector<8x128xf32>
    %10 = tpu.matmul %8, %9, %cst_10 {dimension_numbers = #tpu.dot_dimension_numbers<[1], [0], [0], [1], [0, 0, 1, 1], [], []>} : vector<8x512xf32>, vector<512x128xf32>, vector<8x128xf32> -> vector<8x128xf32>
    %c0_11 = arith.constant 0 : index
    %c0_12 = arith.constant 0 : index
    %11 = vector.load %arg5[%c0_11, %c0_12] : memref<1x128xf32, #tpu.memory_space<vmem>>, vector<1x128xf32>
    %12 = vector.broadcast %11 : vector<1x128xf32> to vector<8x128xf32>
    %13 = arith.addf %10, %12 : vector<8x128xf32>
    %c0_13 = arith.constant 0 : index
    %c0_14 = arith.constant 0 : index
    %14 = vector.load %arg6[%c0_13, %c0_14] : memref<8x128xf32, #tpu.memory_space<vmem>>, vector<8x128xf32>
    tpu.vector_store %arg6[%c0_13, %c0_14], %13 {strides = array<i32>} : memref<8x128xf32, #tpu.memory_space<vmem>>, vector<8x128xf32>,
    return
  }
  func.func @transform_0(%arg0: i32) -> (i32, i32) {
    %c0_i32 = arith.constant 0 : i32
    %c0_i32_0 = arith.constant 0 : i32
    return %arg0, %c0_i32 : i32, i32
  }
  func.func @transform_1(%arg0: i32) -> (i32, i32) {
    %c0_i32 = arith.constant 0 : i32
    %c0_i32_0 = arith.constant 0 : i32
    %c0_i32_1 = arith.constant 0 : i32
    return %c0_i32, %c0_i32_0 : i32, i32
  }
  func.func @transform_2(%arg0: i32) -> (i32, i32) {
    %c0_i32 = arith.constant 0 : i32
    %c0_i32_0 = arith.constant 0 : i32
    %c0_i32_1 = arith.constant 0 : i32
    return %c0_i32, %c0_i32_0 : i32, i32
  }
  func.func @transform_3(%arg0: i32) -> (i32, i32) {
    %c0_i32 = arith.constant 0 : i32
    %c0_i32_0 = arith.constant 0 : i32
    %c0_i32_1 = arith.constant 0 : i32
    return %c0_i32, %c0_i32_0 : i32, i32
  }
  func.func @transform_4(%arg0: i32) -> (i32, i32) {
    %c0_i32 = arith.constant 0 : i32
    %c0_i32_0 = arith.constant 0 : i32
    %c0_i32_1 = arith.constant 0 : i32
    return %c0_i32, %c0_i32_0 : i32, i32
  }
  func.func @transform_5(%arg0: i32) -> (i32, i32) {
    %c0_i32 = arith.constant 0 : i32
    %c0_i32_0 = arith.constant 0 : i32
    return %arg0, %c0_i32 : i32, i32
  }
  func.func @transform_6(%arg0: i32) -> (i32, i32) {
    %c0_i32 = arith.constant 0 : i32
    %c0_i32_0 = arith.constant 0 : i32
    return %arg0, %c0_i32 : i32, i32
  }
}

</mosaic_0001>

<bundles_post_ra>
// kernel: tpu_custom_call.1
= control target key start
LH: loop header
LB: loop body
LE: loop exit
PB: predicated region body
PF: predicated region fallthrough
CT: control target
= control target key end

     0   :  { %s2224_s0 = inlined_call_operand.hbm [shape: f32[16,768], index: 0, kind: input, shape index: {}]   ;;  %s2225_s1 = inlined_call_operand.hbm [shape: f32[768,512], index: 1, kind: input, shape index: {}]   ;;  %s2226_s2 = inlined_call_operand.hbm [shape: f32[1,512], index: 2, kind: input, shape index: {}]   ;;  %s2227_s3 = inlined_call_operand.hbm [shape: f32[512,128], index: 3, kind: input, shape index: {}]   ;;  %s2228_s4 = inlined_call_operand.hbm [shape: f32[1,128], index: 4, kind: input, shape index: {}]   ;;  %s2229_s5 = inlined_call_operand.hbm [shape: f32[16,128], index: 5, kind: output, shape index: {0}]   ;;  %s2230_s6 = inlined_call_operand.hbm [shape: f32[16,512], index: 6, kind: output, shape index: {1}]  }
   0x1   :  { %2231 = sst [smem:[#allocation19_spill]] %s2225_s1 }
   0x2   :  { %2232 = sst [smem:[#allocation20_spill]] %s2226_s2 }
   0x3   :  { %12 = vsyncpa [#allocation3], 0 }
   0x4   :  { %14 = vsyncpa [#allocation3 + $0x1], 0 }
   0x5   :  { %15 = vsyncpa [#allocation6], 0 }
   0x6   :  { %16 = vsyncpa [#allocation9], 0 }
   0x7   :  { %17 = vsyncpa [#allocation4], 0 }
   0x8   :  { %19 = vsyncpa [#allocation4 + $0x1], 0 }
   0x9   :  { %20 = vsyncpa [#allocation13], 0 }
   0xa   :  { %22 = vsyncpa [#allocation13 + $0x1], 0  ;;  %s1985_s21 = smov 0   ;;  %s1987_s22 = smov 0  }
   0xb   :  { %s1989_s23 = smov 0   ;;  %s1991_s24 = smov 0  }
   0xc LB: > { %s2233_s1 = sld [smem:[#allocation19_spill]]  ;;  %s2009_s28 = sadd.s32 4294967295, %s1940_s24   ;;  %s1940_s24 = sphi %s1991_s24, %s2245_s24   ;;  %s1936_s23 = sphi %s1989_s23, %s2244_s23   ;;  %s1932_s22 = sphi %s1987_s22, %s2243_s22   ;;  %s1928_s21 = sphi %s1985_s21, %s2242_s21  }
   0xd   : > { %p1558_p0 = scmp.ge.s32.totalorder %s1940_s24, 1  ;;  %p49_p1 = scmp.eq.s32.totalorder %s2009_s28, 0 }
   0xe   : > { %p195_p2 = scmp.lt.s32.totalorder %s1940_s24, 3  ;;  %s1942_s30 = smov [#allocation5]  }
   0xf   : > { %s208_s7 = sshll.u32 %s1942_s30, 4  ;;  %s232_s10 = sshll.u32 %s2227_s3, 4  ;;  %s209_s7 = int_to_ptr.vmem [resolvable:$true] %s208_s7  ;;  %s233_s10 = int_to_ptr.hbm [resolvable:$true] %s232_s10 }
  0x10   : > { %p2014_p3 = pnand %p1558_p0, %p195_p2  ;;  %s1943_s12 = smov [#allocation8]  }
  0x11   : > { %s234_s13 = sshll.u32 %s1943_s12, 4  ;;  %s1944_s14 = smov 512   ;;  %s235_s13 = int_to_ptr.vmem [resolvable:$true] %s234_s13 }
  0x12   : > { %s206_s27 = sshll.u32 %s2233_s1, 4  ;;  %p1605_p4 = pneg %p2014_p3  ;;  %s207_s27 = int_to_ptr.hbm [resolvable:$true] %s206_s27 }
  0x13   : > { %s1945_s15 = smov 32   ;;  %s1946_s16 = smov 128  }
  0x14   : > { %p2026_p6 = pnand %p1605_p4, %p49_p1  ;;  %s1947_s17 = smov 8  }
  0x15   : > { %s2236_s2 = sld [smem:[#allocation20_spill]]  ;;  %s1948_s25 = smov [#allocation7]  }
  0x16   : > { %1608 = dma.hbm_to_vmem [thread:$0]  (!%p2026_p6), %s207_s27, 49152, %s209_s7, [#allocation6], %s1944_s14, %s1944_s14, %s1945_s15  }
  0x17   : > { %1614 = dma.hbm_to_vmem [thread:$0]  (!%p2026_p6), %s233_s10, 8192, %s235_s13, [#allocation9], %s1946_s16, %s1946_s16, %s1947_s17  }
  0x18   : > { %s223_s26 = sshll.u32 %s1948_s25, 4  ;;  %s247_s7 = sshll.u32 %s2228_s4, 4  ;;  %s224_s26 = int_to_ptr.vmem [resolvable:$true] %s223_s26  ;;  %s248_s7 = int_to_ptr.hbm [resolvable:$true] %s247_s7 }
  0x19   : > { %s1949_s8 = smov [#allocation10]   ;;  %s1557_s10 = sadd.s32 4294967294, %s1940_s24  }
  0x1a   : > { %s249_s9 = sshll.u32 %s1949_s8, 4  ;;  %s2046_s12 = sadd.s32 1, %s1940_s24   ;;  %s250_s9 = int_to_ptr.vmem [resolvable:$true] %s249_s9 }
  0x1b   : > { %s221_s20 = sshll.u32 %s2236_s2, 4  ;;  %s32_s13 = ssub.s32 %s1940_s24, %s2046_s12  ;;  %s222_s20 = int_to_ptr.hbm [resolvable:$true] %s221_s20 }
  0x1c   : > { %1611 = dma.hbm_to_vmem [thread:$0]  (!%p2026_p6), %s222_s20, 64, %s224_s26, [#allocation6]  }
  0x1d   : > { %1617 = dma.hbm_to_vmem [thread:$0]  (!%p2026_p6), %s248_s7, 16, %s250_s9, [#allocation9]  }
  0x1e   : > { %s35_s14 = sadd.s32 1, %s1936_s23  ;;  %p33_p7 = scmp.eq.s32.totalorder %s32_s13, 0 }
  0x1f   : > { %p42_p8 = scmp.ne.s32.totalorder %s1936_s23, %s1932_s22  ;;  %p43_p9 = scmp.eq.s32.totalorder %s1940_s24, 0 }
  0x20   : > { %p48_p10 = scmp.ne.s32.totalorder %s1932_s22, %s1928_s21  ;;  %p156_p13 = scmp.eq.s32.totalorder %s2009_s28, 1 }
  0x21   : > { %s2057_s15 = scalar_select %p33_p7, %s1936_s23, %s35_s14  }
  0x22   : > { %p44_p11 = por %p43_p9, %p42_p8  ;;  %p2061_p12 = por %p49_p1, %p48_p10 }
  0x23   : > { %p162_p0 = scmp.eq.s32.totalorder %s1557_s10, 1  ;;  %p1633_p2 = scmp.lt.s32.totalorder %s1940_s24, 2 }
  0x24   : > { %s260_s11 = sand.u32 1, %s1936_s23   ;;  %p2068_p4 = por %p156_p13, %p42_p8 }
  0x25   : > { %p2072_p6 = por %p162_p0, %p48_p10  ;;  %s1580_s19 = smul.u32 48, %s260_s11 }
  0x26   : > { %s1581_s20 = smul.u32 48, %s1940_s24  ;;  %p2077_p7 = pnand %p1633_p2, %p44_p11 }
  0x27   : > { %s264_s7 = scalar_lea.vmem [#allocation2], %s1580_s19  ;;  %s261_s10 = scalar_lea.sflag [#allocation3], %s260_s11 }
  0x28   : > { %s269_s30 = scalar_lea.hbm %s2224_s0, %s1581_s20  ;;  %s273_s8 = sshll.u32 %s264_s7, 4  ;;  %s274_s8 = int_to_ptr.vmem [resolvable:$true] %s273_s8 }
  0x29   : > { %s271_s9 = sshll.u32 %s269_s30, 4  ;;  %p1808_p9 = pneg %p2077_p7  ;;  %s272_s9 = int_to_ptr.hbm [resolvable:$true] %s271_s9 }
  0x2a   : > { %s1804_s13 = sshra.s32 %s272_s9, 4  ;;  %s1811_s26 = scalar_lea.hbm %s2224_s0, 96  ;;  %s1805_s13 = int_to_ptr.hbm [resolvable:$true] %s1804_s13 }
  0x2b   : > { %s1806_s14 = scalar_lea.hbm %s1805_s13, 48  ;;  %p1812_p13 = scmp.lt.s32.totalorder %s1805_s13, %s2224_s0 }
  0x2c   : > { %p1807_p8 = scmp.ne.s32.totalorder %s1805_s13, %s1806_s14  ;;  %p1813_p0 = scmp.lt.s32.totalorder %s1811_s26, %s1806_s14 }
  0x2e   : > { %p1809_p10 = pnand %p1808_p9, %p1807_p8  ;;  %p1814_p2 = por %p1813_p0, %p1812_p13 }
  0x30   : > { %p1810_p11 = pneg %p1809_p10 }
  0x32   : > { %p1815_p5 = pnand %p1814_p2, %p1810_p11 }
  0x34   : > { %1818 = shalt.err (!%p1815_p5)
}
  0x35   : > { %1621 = dma.hbm_to_vmem [thread:$0]  (!%p2077_p7), %s272_s9, 768, %s274_s8, %s261_s10  }
  0x36   : > { %282 = sbr.rel (%p2014_p3) target bundleno = 574 (0x23e), region = 40  ;;  %s2097_s11 = sand.u32 (!%p2014_p3), 1, %s1932_s22  }
  0x37   : > { %s1582_s1 = smul.u32 (!%p2014_p3), 48, %s2097_s11  ;;  %s285_s2 = scalar_lea.sflag (!%p2014_p3), [#allocation3], %s2097_s11 }
  0x39   : > { %s2101_s19 = scalar_lea.vmem (!%p2014_p3), [#allocation2], %s1582_s1 }
  0x3b   : > { %1907 = dma.done.wait (%p2061_p12), %s285_s2, 768  }
  0x3c   : > { %1909 = vsyncadd (%p2061_p12), %s285_s2, 4294966528 }
  0x3d   : > { %1911 = dma.done.wait (%p49_p1), [#allocation6], 49216  }
  0x3e   : > { %1913 = vsyncadd (%p49_p1), [#allocation6], 4294918080 }
  0x3f   : > { %1915 = dma.done.wait (%p49_p1), [#allocation9], 8208  }
  0x40   : > { %1917 = vsyncadd (%p49_p1), [#allocation9], 4294959088  ;;  %v409_v0 = vld [vmem:[#allocation5 + $0x1e0] sm:$0xff]  ;;  %v410_v63 = vld [vmem:[#allocation5 + $0x1e8] sm:$0xff]  ;;  %s1571_s29 = sshll.u32 %s2097_s11, 5  ;;  %s1579_s25 = sshll.u32 %s2009_s28, 5 }
  0x41   : > { %v537_v1 = vld [vmem:[#allocation5 + $0x5e0] sm:$0xff]  ;;  %743 = vmatpush.msra.mxu0 %v409_v0  ;;  %s2163_s16 = scalar_lea.vmem [#allocation12], %s1571_s29  ;;  %s1411_s8 = scalar_lea.hbm %s2230_s6, %s1579_s25 }
  0x42   : > { %v405_v2 = vld [vmem:[#allocation5 + $0x1c0] sm:$0xff]  ;;  %783 = vmatpush.msra.mxu2 %v537_v1  ;;  %s1413_s9 = sshll.u32 %s2163_s16, 4  ;;  %s1415_s10 = sshll.u32 %s1411_s8, 4  ;;  %s1414_s9 = int_to_ptr.vmem [resolvable:$true] %s1413_s9  ;;  %s1416_s10 = int_to_ptr.hbm [resolvable:$true] %s1415_s10 }
  0x43   : > { %v473_v3 = vld [vmem:[#allocation5 + $0x3e0] sm:$0xff]  ;;  %744 = vmatpush.msra.mxu0 %v405_v2  ;;  %s1386_s13 = scalar_lea.sflag [#allocation13], %s2097_s11  ;;  %s1848_s14 = sshra.s32 %s1416_s10, 4  ;;  %s1849_s14 = int_to_ptr.hbm [resolvable:$true] %s1848_s14 }
  0x44   : > { %v533_v4 = vld [vmem:[#allocation5 + $0x5c0] sm:$0xff]  ;;  %763 = vmatpush.msra.mxu1 %v473_v3  ;;  %s1850_s26 = scalar_lea.hbm %s1849_s14, 32  ;;  %s1854_s1 = scalar_lea.hbm %s2230_s6, 64 }
  0x45   : > { %v601_v5 = vld [vmem:[#allocation5 + $0x7e0] sm:$0xff]  ;;  %784 = vmatpush.msra.mxu2 %v533_v4  ;;  %v406_v4 = vld [vmem:[#allocation5 + $0x1c8] sm:$0xff]  ;;  %p1851_p1 = scmp.ne.s32.totalorder %s1849_s14, %s1850_s26  ;;  %p1855_p12 = scmp.lt.s32.totalorder %s1849_s14, %s2230_s6 }
  0x46   : > { %803 = vmatpush.msra.mxu3 %v601_v5  ;;  %v401_v6 = vld [vmem:[#allocation5 + $0x1a0] sm:$0xff]  ;;  %v474_v5 = vld [vmem:[#allocation5 + $0x3e8] sm:$0xff]  ;;  %p1856_p7 = scmp.lt.s32.totalorder %s1854_s1, %s1850_s26 }
  0x47   : > { %v469_v7 = vld [vmem:[#allocation5 + $0x3c0] sm:$0xff]  ;;  %745 = vmatpush.msra.mxu0 %v401_v6  ;;  %p1852_p3 = pnand %p1851_p1, %p2068_p4 }
  0x48   : > { %v529_v8 = vld [vmem:[#allocation5 + $0x5a0] sm:$0xff]  ;;  %764 = vmatpush.msra.mxu1 %v469_v7  ;;  %p1857_p8 = por %p1856_p7, %p1855_p12 }
  0x49   : > { %v597_v9 = vld [vmem:[#allocation5 + $0x7c0] sm:$0xff]  ;;  %785 = vmatpush.msra.mxu2 %v529_v8  ;;  %v402_v8 = vld [vmem:[#allocation5 + $0x1a8] sm:$0xff]  ;;  %p1853_p5 = pneg %p1852_p3 }
  0x4a   : > { %v465_v10 = vld [vmem:[#allocation5 + $0x3a0] sm:$0xff]  ;;  %804 = vmatpush.msra.mxu3 %v597_v9  ;;  %v470_v9 = vld [vmem:[#allocation5 + $0x3c8] sm:$0xff] }
  0x4b   : > { %v397_v11 = vld [vmem:[#allocation5 + $0x180] sm:$0xff]  ;;  %765 = vmatpush.msra.mxu1 %v465_v10  ;;  %p1858_p9 = pnand %p1857_p8, %p1853_p5 }
  0x4c   : > { %v525_v12 = vld [vmem:[#allocation5 + $0x580] sm:$0xff]  ;;  %746 = vmatpush.msra.mxu0 %v397_v11 }
  0x4d   : > { %v593_v13 = vld [vmem:[#allocation5 + $0x7a0] sm:$0xff]  ;;  %786 = vmatpush.msra.mxu2 %v525_v12  ;;  %v398_v12 = vld [vmem:[#allocation5 + $0x188] sm:$0xff] }
  0x4e   : > { %v461_v14 = vld [vmem:[#allocation5 + $0x380] sm:$0xff]  ;;  %805 = vmatpush.msra.mxu3 %v593_v13  ;;  %v466_v13 = vld [vmem:[#allocation5 + $0x3a8] sm:$0xff] }
  0x4f   : > { %v589_v15 = vld [vmem:[#allocation5 + $0x780] sm:$0xff]  ;;  %766 = vmatpush.msra.mxu1 %v461_v14 }
  0x50   : > { %v393_v16 = vld [vmem:[#allocation5 + $0x160] sm:$0xff]  ;;  %806 = vmatpush.msra.mxu3 %v589_v15 }
  0x51   : > { %v521_v17 = vld [vmem:[#allocation5 + $0x560] sm:$0xff]  ;;  %747 = vmatpush.msra.mxu0 %v393_v16  ;;  %v394_v16 = vld [vmem:[#allocation5 + $0x168] sm:$0xff] }
  0x52   : > { %v457_v18 = vld [vmem:[#allocation5 + $0x360] sm:$0xff]  ;;  %787 = vmatpush.msra.mxu2 %v521_v17  ;;  %v462_v17 = vld [vmem:[#allocation5 + $0x388] sm:$0xff] }
  0x53   : > { %v585_v19 = vld [vmem:[#allocation5 + $0x760] sm:$0xff]  ;;  %767 = vmatpush.msra.mxu1 %v457_v18 }
  0x54   : > { %v389_v20 = vld [vmem:[#allocation5 + $0x140] sm:$0xff]  ;;  %807 = vmatpush.msra.mxu3 %v585_v19 }
  0x55   : > { %v517_v21 = vld [vmem:[#allocation5 + $0x540] sm:$0xff]  ;;  %748 = vmatpush.msra.mxu0 %v389_v20  ;;  %v390_v20 = vld [vmem:[#allocation5 + $0x148] sm:$0xff] }
  0x56   : > { %v453_v22 = vld [vmem:[#allocation5 + $0x340] sm:$0xff]  ;;  %788 = vmatpush.msra.mxu2 %v517_v21  ;;  %v458_v21 = vld [vmem:[#allocation5 + $0x368] sm:$0xff] }
  0x57   : > { %v581_v23 = vld [vmem:[#allocation5 + $0x740] sm:$0xff]  ;;  %768 = vmatpush.msra.mxu1 %v453_v22 }
  0x58   : > { %v385_v24 = vld [vmem:[#allocation5 + $0x120] sm:$0xff]  ;;  %808 = vmatpush.msra.mxu3 %v581_v23 }
  0x59   : > { %v513_v25 = vld [vmem:[#allocation5 + $0x520] sm:$0xff]  ;;  %749 = vmatpush.msra.mxu0 %v385_v24  ;;  %v386_v24 = vld [vmem:[#allocation5 + $0x128] sm:$0xff] }
  0x5a   : > { %v449_v26 = vld [vmem:[#allocation5 + $0x320] sm:$0xff]  ;;  %789 = vmatpush.msra.mxu2 %v513_v25  ;;  %v454_v25 = vld [vmem:[#allocation5 + $0x348] sm:$0xff] }
  0x5b   : > { %v577_v27 = vld [vmem:[#allocation5 + $0x720] sm:$0xff]  ;;  %769 = vmatpush.msra.mxu1 %v449_v26 }
  0x5c   : > { %v381_v28 = vld [vmem:[#allocation5 + $0x100] sm:$0xff]  ;;  %809 = vmatpush.msra.mxu3 %v577_v27 }
  0x5d   : > { %v509_v29 = vld [vmem:[#allocation5 + $0x500] sm:$0xff]  ;;  %750 = vmatpush.msra.mxu0 %v381_v28  ;;  %v382_v28 = vld [vmem:[#allocation5 + $0x108] sm:$0xff] }
  0x5e   : > { %v445_v30 = vld [vmem:[#allocation5 + $0x300] sm:$0xff]  ;;  %790 = vmatpush.msra.mxu2 %v509_v29  ;;  %v450_v29 = vld [vmem:[#allocation5 + $0x328] sm:$0xff] }
  0x5f   : > { %v573_v31 = vld [vmem:[#allocation5 + $0x700] sm:$0xff]  ;;  %770 = vmatpush.msra.mxu1 %v445_v30 }
  0x60   : > { %v377_v32 = vld [vmem:[#allocation5 + $0xe0] sm:$0xff]  ;;  %810 = vmatpush.msra.mxu3 %v573_v31 }
  0x61   : > { %v505_v33 = vld [vmem:[#allocation5 + $0x4e0] sm:$0xff]  ;;  %751 = vmatpush.msra.mxu0 %v377_v32  ;;  %v378_v32 = vld [vmem:[#allocation5 + $0xe8] sm:$0xff] }
  0x62   : > { %v441_v34 = vld [vmem:[#allocation5 + $0x2e0] sm:$0xff]  ;;  %791 = vmatpush.msra.mxu2 %v505_v33  ;;  %v446_v33 = vld [vmem:[#allocation5 + $0x308] sm:$0xff] }
  0x63   : > { %v569_v35 = vld [vmem:[#allocation5 + $0x6e0] sm:$0xff]  ;;  %771 = vmatpush.msra.mxu1 %v441_v34 }
  0x64   : > { %v373_v36 = vld [vmem:[#allocation5 + $0xc0] sm:$0xff]  ;;  %811 = vmatpush.msra.mxu3 %v569_v35 }
  0x65   : > { %v501_v37 = vld [vmem:[#allocation5 + $0x4c0] sm:$0xff]  ;;  %752 = vmatpush.msra.mxu0 %v373_v36  ;;  %v374_v36 = vld [vmem:[#allocation5 + $0xc8] sm:$0xff] }
  0x66   : > { %v437_v38 = vld [vmem:[#allocation5 + $0x2c0] sm:$0xff]  ;;  %792 = vmatpush.msra.mxu2 %v501_v37  ;;  %v442_v37 = vld [vmem:[#allocation5 + $0x2e8] sm:$0xff] }
  0x67   : > { %v565_v39 = vld [vmem:[#allocation5 + $0x6c0] sm:$0xff]  ;;  %772 = vmatpush.msra.mxu1 %v437_v38 }
  0x68   : > { %v369_v40 = vld [vmem:[#allocation5 + $0xa0] sm:$0xff]  ;;  %812 = vmatpush.msra.mxu3 %v565_v39 }
  0x69   : > { %v497_v41 = vld [vmem:[#allocation5 + $0x4a0] sm:$0xff]  ;;  %753 = vmatpush.msra.mxu0 %v369_v40  ;;  %v370_v40 = vld [vmem:[#allocation5 + $0xa8] sm:$0xff] }
  0x6a   : > { %v433_v42 = vld [vmem:[#allocation5 + $0x2a0] sm:$0xff]  ;;  %793 = vmatpush.msra.mxu2 %v497_v41  ;;  %v438_v41 = vld [vmem:[#allocation5 + $0x2c8] sm:$0xff] }
  0x6b   : > { %v561_v43 = vld [vmem:[#allocation5 + $0x6a0] sm:$0xff]  ;;  %773 = vmatpush.msra.mxu1 %v433_v42 }
  0x6c   : > { %v365_v44 = vld [vmem:[#allocation5 + $0x80] sm:$0xff]  ;;  %813 = vmatpush.msra.mxu3 %v561_v43 }
  0x6d   : > { %v493_v45 = vld [vmem:[#allocation5 + $0x480] sm:$0xff]  ;;  %754 = vmatpush.msra.mxu0 %v365_v44  ;;  %v366_v44 = vld [vmem:[#allocation5 + $0x88] sm:$0xff] }
  0x6e   : > { %v429_v46 = vld [vmem:[#allocation5 + $0x280] sm:$0xff]  ;;  %794 = vmatpush.msra.mxu2 %v493_v45  ;;  %v434_v45 = vld [vmem:[#allocation5 + $0x2a8] sm:$0xff] }
  0x6f   : > { %v557_v47 = vld [vmem:[#allocation5 + $0x680] sm:$0xff]  ;;  %774 = vmatpush.msra.mxu1 %v429_v46 }
  0x70   : > { %v361_v48 = vld [vmem:[#allocation5 + $0x60] sm:$0xff]  ;;  %814 = vmatpush.msra.mxu3 %v557_v47 }
  0x71   : > { %v489_v49 = vld [vmem:[#allocation5 + $0x460] sm:$0xff]  ;;  %755 = vmatpush.msra.mxu0 %v361_v48  ;;  %v362_v48 = vld [vmem:[#allocation5 + $0x68] sm:$0xff] }
  0x72   : > { %v425_v50 = vld [vmem:[#allocation5 + $0x260] sm:$0xff]  ;;  %795 = vmatpush.msra.mxu2 %v489_v49  ;;  %v430_v49 = vld [vmem:[#allocation5 + $0x288] sm:$0xff] }
  0x73   : > { %v553_v51 = vld [vmem:[#allocation5 + $0x660] sm:$0xff]  ;;  %775 = vmatpush.msra.mxu1 %v425_v50 }
  0x74   : > { %v357_v52 = vld [vmem:[#allocation5 + $0x40] sm:$0xff]  ;;  %815 = vmatpush.msra.mxu3 %v553_v51 }
  0x75   : > { %v485_v53 = vld [vmem:[#allocation5 + $0x440] sm:$0xff]  ;;  %756 = vmatpush.msra.mxu0 %v357_v52  ;;  %v358_v52 = vld [vmem:[#allocation5 + $0x48] sm:$0xff] }
  0x76   : > { %v421_v54 = vld [vmem:[#allocation5 + $0x240] sm:$0xff]  ;;  %796 = vmatpush.msra.mxu2 %v485_v53  ;;  %v426_v53 = vld [vmem:[#allocation5 + $0x268] sm:$0xff] }
  0x77   : > { %v549_v55 = vld [vmem:[#allocation5 + $0x640] sm:$0xff]  ;;  %776 = vmatpush.msra.mxu1 %v421_v54 }
  0x78   : > { %v353_v56 = vld [vmem:[#allocation5 + $0x20] sm:$0xff]  ;;  %816 = vmatpush.msra.mxu3 %v549_v55 }
  0x79   : > { %v481_v57 = vld [vmem:[#allocation5 + $0x420] sm:$0xff]  ;;  %757 = vmatpush.msra.mxu0 %v353_v56  ;;  %v354_v56 = vld [vmem:[#allocation5 + $0x28] sm:$0xff] }
  0x7a   : > { %v417_v58 = vld [vmem:[#allocation5 + $0x220] sm:$0xff]  ;;  %797 = vmatpush.msra.mxu2 %v481_v57  ;;  %v422_v57 = vld [vmem:[#allocation5 + $0x248] sm:$0xff] }
  0x7b   : > { %v545_v59 = vld [vmem:[#allocation5 + $0x620] sm:$0xff]  ;;  %777 = vmatpush.msra.mxu1 %v417_v58 }
  0x7c   : > { %v349_v60 = vld [vmem:[#allocation5] sm:$0xff]  ;;  %817 = vmatpush.msra.mxu3 %v545_v59 }
  0x7d   : > { %v477_v61 = vld [vmem:[#allocation5 + $0x400] sm:$0xff]  ;;  %758 = vmatpush.msra.mxu0 %v349_v60  ;;  %v350_v60 = vld [vmem:[#allocation5 + $0x8] sm:$0xff] }
  0x7e   : > { %v665_v62 = vld [vmem:[#allocation5 + $0x9e0] sm:$0xff]  ;;  %798 = vmatpush.msra.mxu2 %v477_v61  ;;  %v418_v61 = vld [vmem:[#allocation5 + $0x228] sm:$0xff] }
  0x7f   : > { %v413_v0 = vld [vmem:[#allocation5 + $0x200] sm:$0xff]  ;;  %823 = vmatpush.msrb.mxu0 %v665_v62 }
  0x80   : > { %v541_v1 = vld [vmem:[#allocation5 + $0x600] sm:$0xff]  ;;  %863 = vmatpush.msrb.mxu2 %v410_v63  ;;  %778 = vmatpush.msra.mxu1 %v413_v0  ;;  %v538_v0 = vld [vmem:[#allocation5 + $0x5e8] sm:$0xff] }
  0x81   : > { %v661_v2 = vld [vmem:[#allocation5 + $0x9c0] sm:$0xff]  ;;  %818 = vmatpush.msra.mxu3 %v541_v1  ;;  %v666_v1 = vld [vmem:[#allocation5 + $0x9e8] sm:$0xff] }
  0x82   : > { %v729_v3 = vld [vmem:[#allocation5 + $0xbe0] sm:$0xff]  ;;  %824 = vmatpush.msrb.mxu0 %v661_v2  ;;  %864 = vmatpush.msrb.mxu2 %v406_v4  ;;  %v2124_v4 = vld [vmem:[%s2101_s19 + $0x8] sm:$0xff] }
  0x83   : > { %v657_v6 = vld [vmem:[#allocation5 + $0x9a0] sm:$0xff]  ;;  %843 = vmatpush.msrb.mxu1 %v729_v3  ;;  %883 = vmatpush.msrb.mxu3 %v474_v5  ;;  %v414_v3 = vld [vmem:[#allocation5 + $0x208] sm:$0xff] }
  0x84   : > { %v725_v7 = vld [vmem:[#allocation5 + $0xbc0] sm:$0xff]  ;;  %825 = vmatpush.msrb.mxu0 %v657_v6  ;;  %865 = vmatpush.msrb.mxu2 %v402_v8  ;;  %v2127_v5 = vld [vmem:[%s2101_s19 + $0x18] sm:$0xff] }
  0x85   : > { %v653_v10 = vld [vmem:[#allocation5 + $0x980] sm:$0xff]  ;;  %844 = vmatpush.msrb.mxu1 %v725_v7  ;;  %884 = vmatpush.msrb.mxu3 %v470_v9  ;;  %v534_v6 = vld [vmem:[#allocation5 + $0x5c8] sm:$0xff] }
  0x86   : > { %v721_v11 = vld [vmem:[#allocation5 + $0xba0] sm:$0xff]  ;;  %826 = vmatpush.msrb.mxu0 %v653_v10  ;;  %866 = vmatpush.msrb.mxu2 %v398_v12  ;;  %v602_v7 = vld [vmem:[#allocation5 + $0x7e8] sm:$0xff] }
  0x87   : > { %v649_v14 = vld [vmem:[#allocation5 + $0x960] sm:$0xff]  ;;  %845 = vmatpush.msrb.mxu1 %v721_v11  ;;  %885 = vmatpush.msrb.mxu3 %v466_v13  ;;  %v662_v8 = vld [vmem:[#allocation5 + $0x9c8] sm:$0xff] }
  0x88   : > { %v717_v15 = vld [vmem:[#allocation5 + $0xb80] sm:$0xff]  ;;  %827 = vmatpush.msrb.mxu0 %v649_v14  ;;  %867 = vmatpush.msrb.mxu2 %v394_v16  ;;  %v730_v9 = vld [vmem:[#allocation5 + $0xbe8] sm:$0xff] }
  0x89   : > { %v645_v18 = vld [vmem:[#allocation5 + $0x940] sm:$0xff]  ;;  %846 = vmatpush.msrb.mxu1 %v717_v15  ;;  %886 = vmatpush.msrb.mxu3 %v462_v17  ;;  %v530_v10 = vld [vmem:[#allocation5 + $0x5a8] sm:$0xff] }
  0x8a   : > { %v713_v19 = vld [vmem:[#allocation5 + $0xb60] sm:$0xff]  ;;  %828 = vmatpush.msrb.mxu0 %v645_v18  ;;  %868 = vmatpush.msrb.mxu2 %v390_v20  ;;  %v598_v11 = vld [vmem:[#allocation5 + $0x7c8] sm:$0xff] }
  0x8b   : > { %v641_v22 = vld [vmem:[#allocation5 + $0x920] sm:$0xff]  ;;  %847 = vmatpush.msrb.mxu1 %v713_v19  ;;  %887 = vmatpush.msrb.mxu3 %v458_v21  ;;  %v658_v12 = vld [vmem:[#allocation5 + $0x9a8] sm:$0xff] }
  0x8c   : > { %v709_v23 = vld [vmem:[#allocation5 + $0xb40] sm:$0xff]  ;;  %829 = vmatpush.msrb.mxu0 %v641_v22  ;;  %869 = vmatpush.msrb.mxu2 %v386_v24  ;;  %v726_v13 = vld [vmem:[#allocation5 + $0xbc8] sm:$0xff] }
  0x8d   : > { %v637_v26 = vld [vmem:[#allocation5 + $0x900] sm:$0xff]  ;;  %848 = vmatpush.msrb.mxu1 %v709_v23  ;;  %888 = vmatpush.msrb.mxu3 %v454_v25  ;;  %v526_v14 = vld [vmem:[#allocation5 + $0x588] sm:$0xff] }
  0x8e   : > { %v705_v27 = vld [vmem:[#allocation5 + $0xb20] sm:$0xff]  ;;  %830 = vmatpush.msrb.mxu0 %v637_v26  ;;  %870 = vmatpush.msrb.mxu2 %v382_v28  ;;  %v594_v15 = vld [vmem:[#allocation5 + $0x7a8] sm:$0xff] }
  0x8f   : > { %v633_v30 = vld [vmem:[#allocation5 + $0x8e0] sm:$0xff]  ;;  %849 = vmatpush.msrb.mxu1 %v705_v27  ;;  %889 = vmatpush.msrb.mxu3 %v450_v29  ;;  %v654_v16 = vld [vmem:[#allocation5 + $0x988] sm:$0xff] }
  0x90   : > { %v701_v31 = vld [vmem:[#allocation5 + $0xb00] sm:$0xff]  ;;  %831 = vmatpush.msrb.mxu0 %v633_v30  ;;  %871 = vmatpush.msrb.mxu2 %v378_v32  ;;  %v722_v17 = vld [vmem:[#allocation5 + $0xba8] sm:$0xff] }
  0x91   : > { %v629_v34 = vld [vmem:[#allocation5 + $0x8c0] sm:$0xff]  ;;  %850 = vmatpush.msrb.mxu1 %v701_v31  ;;  %890 = vmatpush.msrb.mxu3 %v446_v33  ;;  %v522_v18 = vld [vmem:[#allocation5 + $0x568] sm:$0xff] }
  0x92   : > { %v697_v35 = vld [vmem:[#allocation5 + $0xae0] sm:$0xff]  ;;  %832 = vmatpush.msrb.mxu0 %v629_v34  ;;  %872 = vmatpush.msrb.mxu2 %v374_v36  ;;  %v590_v19 = vld [vmem:[#allocation5 + $0x788] sm:$0xff] }
  0x93   : > { %v625_v38 = vld [vmem:[#allocation5 + $0x8a0] sm:$0xff]  ;;  %851 = vmatpush.msrb.mxu1 %v697_v35  ;;  %891 = vmatpush.msrb.mxu3 %v442_v37  ;;  %v650_v20 = vld [vmem:[#allocation5 + $0x968] sm:$0xff] }
  0x94   : > { %v693_v39 = vld [vmem:[#allocation5 + $0xac0] sm:$0xff]  ;;  %833 = vmatpush.msrb.mxu0 %v625_v38  ;;  %873 = vmatpush.msrb.mxu2 %v370_v40  ;;  %v718_v21 = vld [vmem:[#allocation5 + $0xb88] sm:$0xff] }
  0x95   : > { %v621_v42 = vld [vmem:[#allocation5 + $0x880] sm:$0xff]  ;;  %852 = vmatpush.msrb.mxu1 %v693_v39  ;;  %892 = vmatpush.msrb.mxu3 %v438_v41  ;;  %v586_v23 = vld [vmem:[#allocation5 + $0x768] sm:$0xff] }
  0x96   : > { %v689_v43 = vld [vmem:[#allocation5 + $0xaa0] sm:$0xff]  ;;  %834 = vmatpush.msrb.mxu0 %v621_v42  ;;  %874 = vmatpush.msrb.mxu2 %v366_v44  ;;  %v518_v24 = vld [vmem:[#allocation5 + $0x548] sm:$0xff] }
  0x97   : > { %v617_v46 = vld [vmem:[#allocation5 + $0x860] sm:$0xff]  ;;  %853 = vmatpush.msrb.mxu1 %v689_v43  ;;  %893 = vmatpush.msrb.mxu3 %v434_v45  ;;  %v646_v25 = vld [vmem:[#allocation5 + $0x948] sm:$0xff] }
  0x98   : > { %v685_v47 = vld [vmem:[#allocation5 + $0xa80] sm:$0xff]  ;;  %835 = vmatpush.msrb.mxu0 %v617_v46  ;;  %875 = vmatpush.msrb.mxu2 %v362_v48  ;;  %v714_v26 = vld [vmem:[#allocation5 + $0xb68] sm:$0xff] }
  0x99   : > { %v613_v50 = vld [vmem:[#allocation5 + $0x840] sm:$0xff]  ;;  %854 = vmatpush.msrb.mxu1 %v685_v47  ;;  %894 = vmatpush.msrb.mxu3 %v430_v49  ;;  %v2135_v27 = vld [vmem:[%s2101_s19 + $0x28] sm:$0xff] }
  0x9a   : > { %v681_v51 = vld [vmem:[#allocation5 + $0xa60] sm:$0xff]  ;;  %836 = vmatpush.msrb.mxu0 %v613_v50  ;;  %876 = vmatpush.msrb.mxu2 %v358_v52  ;;  %v514_v28 = vld [vmem:[#allocation5 + $0x528] sm:$0xff] }
  0x9b   : > { %v609_v54 = vld [vmem:[#allocation5 + $0x820] sm:$0xff]  ;;  %855 = vmatpush.msrb.mxu1 %v681_v51  ;;  %895 = vmatpush.msrb.mxu3 %v426_v53  ;;  %v582_v29 = vld [vmem:[#allocation5 + $0x748] sm:$0xff] }
  0x9c   : > { %v677_v55 = vld [vmem:[#allocation5 + $0xa40] sm:$0xff]  ;;  %837 = vmatpush.msrb.mxu0 %v609_v54  ;;  %877 = vmatpush.msrb.mxu2 %v354_v56  ;;  %v642_v30 = vld [vmem:[#allocation5 + $0x928] sm:$0xff] }
  0x9d   : > { %v605_v58 = vld [vmem:[#allocation5 + $0x800] sm:$0xff]  ;;  %856 = vmatpush.msrb.mxu1 %v677_v55  ;;  %896 = vmatpush.msrb.mxu3 %v422_v57  ;;  %v710_v31 = vld [vmem:[#allocation5 + $0xb48] sm:$0xff] }
  0x9e   : > { %v673_v59 = vld [vmem:[#allocation5 + $0xa20] sm:$0xff]  ;;  %838 = vmatpush.msrb.mxu0 %v605_v58  ;;  %878 = vmatpush.msrb.mxu2 %v350_v60  ;;  %v510_v32 = vld [vmem:[#allocation5 + $0x508] sm:$0xff] }
  0x9f   : > { %v2116_v62 = vld [vmem:[%s2101_s19] sm:$0xff]  ;;  %v2119_v63 = vld [vmem:[%s2101_s19 + $0x10] sm:$0xff]  ;;  %857 = vmatpush.msrb.mxu1 %v673_v59  ;;  %897 = vmatpush.msrb.mxu3 %v418_v61  ;;  %v578_v33 = vld [vmem:[#allocation5 + $0x728] sm:$0xff] }
  0xa0   : > { %v669_v2 = vld [vmem:[#allocation5 + $0xa00] sm:$0xff]  ;;  %759 = vmatmul.f32.vlgmr.msra.gmra.mxu0 %v2116_v62  ;;  %799 = vmatmul.f32.vlgmr.msra.gmra.mxu2 %v2119_v63  ;;  %v638_v34 = vld [vmem:[#allocation5 + $0x908] sm:$0xff] }
  0xa1   : > { %903 = vmatpush.msra.mxu0 %v538_v0  ;;  %943 = vmatpush.msra.mxu2 %v666_v1  ;;  %v2132_v22 = vld [vmem:[%s2101_s19 + $0x20] sm:$0xff]  ;;  %v706_v35 = vld [vmem:[#allocation5 + $0xb28] sm:$0xff] }
  0xa2   : > { %858 = vmatpush.msrb.mxu1 %v669_v2  ;;  %898 = vmatpush.msrb.mxu3 %v414_v3  ;;  %v506_v36 = vld [vmem:[#allocation5 + $0x4e8] sm:$0xff] }
  0xa3   : > { %779 = vmatmul.f32.vlgmr.msra.gmra.mxu1 %v2124_v4  ;;  %819 = vmatmul.f32.vlgmr.msra.gmra.mxu3 %v2127_v5  ;;  %v574_v37 = vld [vmem:[#allocation5 + $0x708] sm:$0xff] }
  0xa4   : > { %904 = vmatpush.msra.mxu0 %v534_v6  ;;  %923 = vmatpush.msra.mxu1 %v602_v7  ;;  %v634_v38 = vld [vmem:[#allocation5 + $0x8e8] sm:$0xff] }
  0xa5   : > { %944 = vmatpush.msra.mxu2 %v662_v8  ;;  %963 = vmatpush.msra.mxu3 %v730_v9  ;;  %v702_v39 = vld [vmem:[#allocation5 + $0xb08] sm:$0xff]  ;;  %v411_v8 = vld [vmem:[#allocation5 + $0x1f0] sm:$0xff] }
  0xa6   : > { %905 = vmatpush.msra.mxu0 %v530_v10  ;;  %924 = vmatpush.msra.mxu1 %v598_v11  ;;  %v502_v40 = vld [vmem:[#allocation5 + $0x4c8] sm:$0xff]  ;;  %v539_v9 = vld [vmem:[#allocation5 + $0x5f0] sm:$0xff] }
  0xa7   : > { %945 = vmatpush.msra.mxu2 %v658_v12  ;;  %964 = vmatpush.msra.mxu3 %v726_v13  ;;  %v570_v41 = vld [vmem:[#allocation5 + $0x6e8] sm:$0xff]  ;;  %v407_v12 = vld [vmem:[#allocation5 + $0x1d0] sm:$0xff] }
  0xa8   : > { %906 = vmatpush.msra.mxu0 %v526_v14  ;;  %925 = vmatpush.msra.mxu1 %v594_v15  ;;  %v630_v42 = vld [vmem:[#allocation5 + $0x8c8] sm:$0xff]  ;;  %v475_v13 = vld [vmem:[#allocation5 + $0x3f0] sm:$0xff] }
  0xa9   : > { %946 = vmatpush.msra.mxu2 %v654_v16  ;;  %965 = vmatpush.msra.mxu3 %v722_v17  ;;  %v698_v43 = vld [vmem:[#allocation5 + $0xae8] sm:$0xff]  ;;  %v535_v14 = vld [vmem:[#allocation5 + $0x5d0] sm:$0xff] }
  0xaa   : > { %907 = vmatpush.msra.mxu0 %v522_v18  ;;  %926 = vmatpush.msra.mxu1 %v590_v19  ;;  %v498_v44 = vld [vmem:[#allocation5 + $0x4a8] sm:$0xff]  ;;  %v603_v15 = vld [vmem:[#allocation5 + $0x7f0] sm:$0xff] }
  0xab   : > { %947 = vmatpush.msra.mxu2 %v650_v20  ;;  %966 = vmatpush.msra.mxu3 %v718_v21  ;;  %v566_v45 = vld [vmem:[#allocation5 + $0x6c8] sm:$0xff]  ;;  %v403_v16 = vld [vmem:[#allocation5 + $0x1b0] sm:$0xff] }
  0xac   : > { %839 = vmatmul.f32.vlgmr.msrb.gmra.mxu0 %v2132_v22  ;;  %927 = vmatpush.msra.mxu1 %v586_v23  ;;  %v626_v46 = vld [vmem:[#allocation5 + $0x8a8] sm:$0xff]  ;;  %v471_v17 = vld [vmem:[#allocation5 + $0x3d0] sm:$0xff] }
  0xad   : > { %908 = vmatpush.msra.mxu0 %v518_v24  ;;  %948 = vmatpush.msra.mxu2 %v646_v25  ;;  %v694_v47 = vld [vmem:[#allocation5 + $0xac8] sm:$0xff]  ;;  %v531_v18 = vld [vmem:[#allocation5 + $0x5b0] sm:$0xff] }
  0xae   : > { %967 = vmatpush.msra.mxu3 %v714_v26  ;;  %859 = vmatmul.f32.vlgmr.msrb.gmra.mxu1 %v2135_v27  ;;  %v494_v48 = vld [vmem:[#allocation5 + $0x488] sm:$0xff]  ;;  %v599_v19 = vld [vmem:[#allocation5 + $0x7d0] sm:$0xff] }
  0xaf   : > { %909 = vmatpush.msra.mxu0 %v514_v28  ;;  %928 = vmatpush.msra.mxu1 %v582_v29  ;;  %v562_v49 = vld [vmem:[#allocation5 + $0x6a8] sm:$0xff]  ;;  %v399_v20 = vld [vmem:[#allocation5 + $0x190] sm:$0xff] }
  0xb0   : > { %949 = vmatpush.msra.mxu2 %v642_v30  ;;  %968 = vmatpush.msra.mxu3 %v710_v31  ;;  %v622_v50 = vld [vmem:[#allocation5 + $0x888] sm:$0xff]  ;;  %v467_v21 = vld [vmem:[#allocation5 + $0x3b0] sm:$0xff] }
  0xb1   : > { %910 = vmatpush.msra.mxu0 %v510_v32  ;;  %929 = vmatpush.msra.mxu1 %v578_v33  ;;  %v690_v51 = vld [vmem:[#allocation5 + $0xaa8] sm:$0xff]  ;;  %v527_v23 = vld [vmem:[#allocation5 + $0x590] sm:$0xff] }
  0xb2   : > { %950 = vmatpush.msra.mxu2 %v638_v34  ;;  %969 = vmatpush.msra.mxu3 %v706_v35  ;;  %v490_v52 = vld [vmem:[#allocation5 + $0x468] sm:$0xff]  ;;  %v595_v24 = vld [vmem:[#allocation5 + $0x7b0] sm:$0xff] }
  0xb3   : > { %911 = vmatpush.msra.mxu0 %v506_v36  ;;  %930 = vmatpush.msra.mxu1 %v574_v37  ;;  %v558_v53 = vld [vmem:[#allocation5 + $0x688] sm:$0xff]  ;;  %v395_v25 = vld [vmem:[#allocation5 + $0x170] sm:$0xff] }
  0xb4   : > { %951 = vmatpush.msra.mxu2 %v634_v38  ;;  %970 = vmatpush.msra.mxu3 %v702_v39  ;;  %v618_v54 = vld [vmem:[#allocation5 + $0x868] sm:$0xff]  ;;  %v463_v26 = vld [vmem:[#allocation5 + $0x390] sm:$0xff] }
  0xb5   : > { %912 = vmatpush.msra.mxu0 %v502_v40  ;;  %931 = vmatpush.msra.mxu1 %v570_v41  ;;  %v686_v55 = vld [vmem:[#allocation5 + $0xa88] sm:$0xff]  ;;  %v523_v28 = vld [vmem:[#allocation5 + $0x570] sm:$0xff] }
  0xb6   : > { %952 = vmatpush.msra.mxu2 %v630_v42  ;;  %971 = vmatpush.msra.mxu3 %v698_v43  ;;  %v486_v56 = vld [vmem:[#allocation5 + $0x448] sm:$0xff]  ;;  %v591_v29 = vld [vmem:[#allocation5 + $0x790] sm:$0xff] }
  0xb7   : > { %913 = vmatpush.msra.mxu0 %v498_v44  ;;  %932 = vmatpush.msra.mxu1 %v566_v45  ;;  %v554_v57 = vld [vmem:[#allocation5 + $0x668] sm:$0xff]  ;;  %v391_v30 = vld [vmem:[#allocation5 + $0x150] sm:$0xff] }
  0xb8   : > { %953 = vmatpush.msra.mxu2 %v626_v46  ;;  %972 = vmatpush.msra.mxu3 %v694_v47  ;;  %v614_v58 = vld [vmem:[#allocation5 + $0x848] sm:$0xff]  ;;  %v459_v31 = vld [vmem:[#allocation5 + $0x370] sm:$0xff] }
  0xb9   : > { %914 = vmatpush.msra.mxu0 %v494_v48  ;;  %933 = vmatpush.msra.mxu1 %v562_v49  ;;  %v682_v59 = vld [vmem:[#allocation5 + $0xa68] sm:$0xff]  ;;  %v519_v32 = vld [vmem:[#allocation5 + $0x550] sm:$0xff] }
  0xba   : > { %954 = vmatpush.msra.mxu2 %v622_v50  ;;  %973 = vmatpush.msra.mxu3 %v690_v51  ;;  %v482_v60 = vld [vmem:[#allocation5 + $0x428] sm:$0xff]  ;;  %v587_v33 = vld [vmem:[#allocation5 + $0x770] sm:$0xff] }
  0xbb   : > { %879 = vmatmul.f32.vlgmr.msrb.gmra.mxu2 %v2116_v62  ;;  %915 = vmatpush.msra.mxu0 %v490_v52  ;;  %v550_v61 = vld [vmem:[#allocation5 + $0x648] sm:$0xff]  ;;  %v387_v34 = vld [vmem:[#allocation5 + $0x130] sm:$0xff] }
  0xbc   : > { %934 = vmatpush.msra.mxu1 %v558_v53  ;;  %955 = vmatpush.msra.mxu2 %v618_v54  ;;  %v610_v0 = vld [vmem:[#allocation5 + $0x828] sm:$0xff]  ;;  %v455_v35 = vld [vmem:[#allocation5 + $0x350] sm:$0xff] }
  0xbd   : > { %974 = vmatpush.msra.mxu3 %v686_v55  ;;  %916 = vmatpush.msra.mxu0 %v486_v56  ;;  %v678_v1 = vld [vmem:[#allocation5 + $0xa48] sm:$0xff]  ;;  %v515_v36 = vld [vmem:[#allocation5 + $0x530] sm:$0xff] }
  0xbe   : > { %899 = vmatmul.f32.vlgmr.msrb.gmra.mxu3 %v2124_v4  ;;  %935 = vmatpush.msra.mxu1 %v554_v57  ;;  %v478_v2 = vld [vmem:[#allocation5 + $0x408] sm:$0xff]  ;;  %v583_v37 = vld [vmem:[#allocation5 + $0x750] sm:$0xff] }
  0xbf   : > { %956 = vmatpush.msra.mxu2 %v614_v58  ;;  %975 = vmatpush.msra.mxu3 %v682_v59  ;;  %v546_v3 = vld [vmem:[#allocation5 + $0x628] sm:$0xff]  ;;  %v383_v38 = vld [vmem:[#allocation5 + $0x110] sm:$0xff] }
  0xc0   : > { %917 = vmatpush.msra.mxu0 %v482_v60  ;;  %936 = vmatpush.msra.mxu1 %v550_v61  ;;  %v606_v6 = vld [vmem:[#allocation5 + $0x808] sm:$0xff]  ;;  %v451_v39 = vld [vmem:[#allocation5 + $0x330] sm:$0xff] }
  0xc1   : > { %v674_v7 = vld [vmem:[#allocation5 + $0xa28] sm:$0xff]  ;;  %957 = vmatpush.msra.mxu2 %v610_v0  ;;  %976 = vmatpush.msra.mxu3 %v678_v1  ;;  %v511_v40 = vld [vmem:[#allocation5 + $0x510] sm:$0xff] }
  0xc2   : > { %918 = vmatpush.msra.mxu0 %v478_v2  ;;  %937 = vmatpush.msra.mxu1 %v546_v3  ;;  %v542_v10 = vld [vmem:[#allocation5 + $0x608] sm:$0xff]  ;;  %v579_v41 = vld [vmem:[#allocation5 + $0x730] sm:$0xff] }
  0xc3   : > { %958 = vmatpush.msra.mxu2 %v606_v6  ;;  %977 = vmatpush.msra.mxu3 %v674_v7  ;;  %v670_v11 = vld [vmem:[#allocation5 + $0xa08] sm:$0xff]  ;;  %v379_v42 = vld [vmem:[#allocation5 + $0xf0] sm:$0xff] }
  0xc4   : > { %959 = vmatmul.f32.vlgmr.msra.gmra.mxu2 %v2132_v22  ;;  %983 = vmatpush.msrb.mxu0 %v411_v8  ;;  %v447_v43 = vld [vmem:[#allocation5 + $0x310] sm:$0xff] }
  0xc5   : > { %1023 = vmatpush.msrb.mxu2 %v539_v9  ;;  %938 = vmatpush.msra.mxu1 %v542_v10  ;;  %v507_v44 = vld [vmem:[#allocation5 + $0x4f0] sm:$0xff] }
  0xc6   : > { %978 = vmatpush.msra.mxu3 %v670_v11  ;;  %919 = vmatmul.f32.vlgmr.msra.gmra.mxu0 %v2119_v63  ;;  %v575_v45 = vld [vmem:[#allocation5 + $0x710] sm:$0xff] }
  0xc7   : > { %979 = vmatmul.f32.vlgmr.msra.gmra.mxu3 %v2135_v27  ;;  %984 = vmatpush.msrb.mxu0 %v407_v12  ;;  %v375_v46 = vld [vmem:[#allocation5 + $0xd0] sm:$0xff] }
  0xc8   : > { %1003 = vmatpush.msrb.mxu1 %v475_v13  ;;  %1024 = vmatpush.msrb.mxu2 %v535_v14  ;;  %v443_v47 = vld [vmem:[#allocation5 + $0x2f0] sm:$0xff] }
  0xc9   : > { %1043 = vmatpush.msrb.mxu3 %v603_v15  ;;  %939 = vmatmul.f32.vlgmr.msra.gmra.mxu1 %v2127_v5  ;;  %v503_v48 = vld [vmem:[#allocation5 + $0x4d0] sm:$0xff]  ;;  %v412_v15 = vld [vmem:[#allocation5 + $0x1f8] sm:$0xff] }
  0xca   : > { %985 = vmatpush.msrb.mxu0 %v403_v16  ;;  %1004 = vmatpush.msrb.mxu1 %v471_v17  ;;  %v571_v49 = vld [vmem:[#allocation5 + $0x6f0] sm:$0xff] }
  0xcb   : > { %1025 = vmatpush.msrb.mxu2 %v531_v18  ;;  %1044 = vmatpush.msrb.mxu3 %v599_v19  ;;  %v371_v50 = vld [vmem:[#allocation5 + $0xb0] sm:$0xff] }
  0xcc   : > { %986 = vmatpush.msrb.mxu0 %v399_v20  ;;  %1005 = vmatpush.msrb.mxu1 %v467_v21  ;;  %v439_v51 = vld [vmem:[#allocation5 + $0x2d0] sm:$0xff]  ;;  %v408_v20 = vld [vmem:[#allocation5 + $0x1d8] sm:$0xff] }
  0xcd   : > { %1026 = vmatpush.msrb.mxu2 %v527_v23  ;;  %1045 = vmatpush.msrb.mxu3 %v595_v24  ;;  %v499_v52 = vld [vmem:[#allocation5 + $0x4b0] sm:$0xff]  ;;  %v476_v21 = vld [vmem:[#allocation5 + $0x3f8] sm:$0xff] }
  0xce   : > { %987 = vmatpush.msrb.mxu0 %v395_v25  ;;  %1006 = vmatpush.msrb.mxu1 %v463_v26  ;;  %v567_v53 = vld [vmem:[#allocation5 + $0x6d0] sm:$0xff]  ;;  %v404_v25 = vld [vmem:[#allocation5 + $0x1b8] sm:$0xff] }
  0xcf   : > { %1027 = vmatpush.msrb.mxu2 %v523_v28  ;;  %1046 = vmatpush.msrb.mxu3 %v591_v29  ;;  %v367_v54 = vld [vmem:[#allocation5 + $0x90] sm:$0xff]  ;;  %v472_v26 = vld [vmem:[#allocation5 + $0x3d8] sm:$0xff] }
  0xd0   : > { %988 = vmatpush.msrb.mxu0 %v391_v30  ;;  %1007 = vmatpush.msrb.mxu1 %v459_v31  ;;  %v435_v55 = vld [vmem:[#allocation5 + $0x2b0] sm:$0xff]  ;;  %v400_v30 = vld [vmem:[#allocation5 + $0x198] sm:$0xff] }
  0xd1   : > { %1028 = vmatpush.msrb.mxu2 %v519_v32  ;;  %1047 = vmatpush.msrb.mxu3 %v587_v33  ;;  %v495_v56 = vld [vmem:[#allocation5 + $0x490] sm:$0xff]  ;;  %v468_v31 = vld [vmem:[#allocation5 + $0x3b8] sm:$0xff] }
  0xd2   : > { %989 = vmatpush.msrb.mxu0 %v387_v34  ;;  %1008 = vmatpush.msrb.mxu1 %v455_v35  ;;  %v563_v57 = vld [vmem:[#allocation5 + $0x6b0] sm:$0xff]  ;;  %v396_v34 = vld [vmem:[#allocation5 + $0x178] sm:$0xff] }
  0xd3   : > { %1029 = vmatpush.msrb.mxu2 %v515_v36  ;;  %1048 = vmatpush.msrb.mxu3 %v583_v37  ;;  %v363_v58 = vld [vmem:[#allocation5 + $0x70] sm:$0xff]  ;;  %v464_v35 = vld [vmem:[#allocation5 + $0x398] sm:$0xff] }
  0xd4   : > { %990 = vmatpush.msrb.mxu0 %v383_v38  ;;  %1009 = vmatpush.msrb.mxu1 %v451_v39  ;;  %v431_v59 = vld [vmem:[#allocation5 + $0x290] sm:$0xff]  ;;  %v392_v38 = vld [vmem:[#allocation5 + $0x158] sm:$0xff] }
  0xd5   : > { %1030 = vmatpush.msrb.mxu2 %v511_v40  ;;  %1049 = vmatpush.msrb.mxu3 %v579_v41  ;;  %v491_v60 = vld [vmem:[#allocation5 + $0x470] sm:$0xff]  ;;  %v460_v39 = vld [vmem:[#allocation5 + $0x378] sm:$0xff] }
  0xd6   : > { %991 = vmatpush.msrb.mxu0 %v379_v42  ;;  %1010 = vmatpush.msrb.mxu1 %v447_v43  ;;  %v559_v61 = vld [vmem:[#allocation5 + $0x690] sm:$0xff]  ;;  %v388_v42 = vld [vmem:[#allocation5 + $0x138] sm:$0xff] }
  0xd7   : > { %1031 = vmatpush.msrb.mxu2 %v507_v44  ;;  %1050 = vmatpush.msrb.mxu3 %v575_v45  ;;  %v359_v0 = vld [vmem:[#allocation5 + $0x50] sm:$0xff]  ;;  %v456_v43 = vld [vmem:[#allocation5 + $0x358] sm:$0xff] }
  0xd8   : > { %992 = vmatpush.msrb.mxu0 %v375_v46  ;;  %1011 = vmatpush.msrb.mxu1 %v443_v47  ;;  %v427_v1 = vld [vmem:[#allocation5 + $0x270] sm:$0xff]  ;;  %v384_v46 = vld [vmem:[#allocation5 + $0x118] sm:$0xff] }
  0xd9   : > { %1032 = vmatpush.msrb.mxu2 %v503_v48  ;;  %1051 = vmatpush.msrb.mxu3 %v571_v49  ;;  %v487_v2 = vld [vmem:[#allocation5 + $0x450] sm:$0xff]  ;;  %v452_v47 = vld [vmem:[#allocation5 + $0x338] sm:$0xff] }
  0xda   : > { %993 = vmatpush.msrb.mxu0 %v371_v50  ;;  %1012 = vmatpush.msrb.mxu1 %v439_v51  ;;  %v555_v3 = vld [vmem:[#allocation5 + $0x670] sm:$0xff]  ;;  %v380_v50 = vld [vmem:[#allocation5 + $0xf8] sm:$0xff] }
  0xdb   : > { %1033 = vmatpush.msrb.mxu2 %v499_v52  ;;  %1052 = vmatpush.msrb.mxu3 %v567_v53  ;;  %v355_v6 = vld [vmem:[#allocation5 + $0x30] sm:$0xff]  ;;  %v448_v51 = vld [vmem:[#allocation5 + $0x318] sm:$0xff] }
  0xdc   : > { %994 = vmatpush.msrb.mxu0 %v367_v54  ;;  %1013 = vmatpush.msrb.mxu1 %v435_v55  ;;  %v423_v7 = vld [vmem:[#allocation5 + $0x250] sm:$0xff]  ;;  %v376_v54 = vld [vmem:[#allocation5 + $0xd8] sm:$0xff] }
  0xdd   : > { %1034 = vmatpush.msrb.mxu2 %v495_v56  ;;  %1053 = vmatpush.msrb.mxu3 %v563_v57  ;;  %v483_v8 = vld [vmem:[#allocation5 + $0x430] sm:$0xff]  ;;  %v444_v55 = vld [vmem:[#allocation5 + $0x2f8] sm:$0xff] }
  0xde   : > { %995 = vmatpush.msrb.mxu0 %v363_v58  ;;  %1014 = vmatpush.msrb.mxu1 %v431_v59  ;;  %v551_v9 = vld [vmem:[#allocation5 + $0x650] sm:$0xff]  ;;  %v372_v58 = vld [vmem:[#allocation5 + $0xb8] sm:$0xff] }
  0xdf   : > { %1035 = vmatpush.msrb.mxu2 %v491_v60  ;;  %1054 = vmatpush.msrb.mxu3 %v559_v61  ;;  %v351_v10 = vld [vmem:[#allocation5 + $0x10] sm:$0xff]  ;;  %v440_v59 = vld [vmem:[#allocation5 + $0x2d8] sm:$0xff] }
  0xe0   : > { %996 = vmatpush.msrb.mxu0 %v359_v0  ;;  %1015 = vmatpush.msrb.mxu1 %v427_v1  ;;  %v419_v11 = vld [vmem:[#allocation5 + $0x230] sm:$0xff]  ;;  %v368_v0 = vld [vmem:[#allocation5 + $0x98] sm:$0xff] }
  0xe1   : > { %1036 = vmatpush.msrb.mxu2 %v487_v2  ;;  %1055 = vmatpush.msrb.mxu3 %v555_v3  ;;  %v479_v12 = vld [vmem:[#allocation5 + $0x410] sm:$0xff]  ;;  %v436_v1 = vld [vmem:[#allocation5 + $0x2b8] sm:$0xff] }
  0xe2   : > { %997 = vmatpush.msrb.mxu0 %v355_v6  ;;  %1016 = vmatpush.msrb.mxu1 %v423_v7  ;;  %v547_v13 = vld [vmem:[#allocation5 + $0x630] sm:$0xff]  ;;  %v364_v6 = vld [vmem:[#allocation5 + $0x78] sm:$0xff] }
  0xe3   : > { %1037 = vmatpush.msrb.mxu2 %v483_v8  ;;  %1056 = vmatpush.msrb.mxu3 %v551_v9  ;;  %v667_v14 = vld [vmem:[#allocation5 + $0x9f0] sm:$0xff]  ;;  %v432_v7 = vld [vmem:[#allocation5 + $0x298] sm:$0xff] }
  0xe4   : > { %998 = vmatpush.msrb.mxu0 %v351_v10  ;;  %1017 = vmatpush.msrb.mxu1 %v419_v11  ;;  %v415_v16 = vld [vmem:[#allocation5 + $0x210] sm:$0xff]  ;;  %v360_v10 = vld [vmem:[#allocation5 + $0x58] sm:$0xff] }
  0xe5   : > { %v543_v17 = vld [vmem:[#allocation5 + $0x610] sm:$0xff]  ;;  %1038 = vmatpush.msrb.mxu2 %v479_v12  ;;  %1057 = vmatpush.msrb.mxu3 %v547_v13  ;;  %v428_v11 = vld [vmem:[#allocation5 + $0x278] sm:$0xff] }
  0xe6   : > { %v663_v18 = vld [vmem:[#allocation5 + $0x9d0] sm:$0xff]  ;;  %1063 = vmatpush.msra.mxu0 %v667_v14  ;;  %1018 = vmatpush.msrb.mxu1 %v415_v16  ;;  %v356_v13 = vld [vmem:[#allocation5 + $0x38] sm:$0xff] }
  0xe7   : > { %v731_v19 = vld [vmem:[#allocation5 + $0xbf0] sm:$0xff]  ;;  %1103 = vmatpush.msra.mxu2 %v412_v15  ;;  %1058 = vmatpush.msrb.mxu3 %v543_v17  ;;  %v424_v14 = vld [vmem:[#allocation5 + $0x258] sm:$0xff] }
  0xe8   : > { %v659_v23 = vld [vmem:[#allocation5 + $0x9b0] sm:$0xff]  ;;  %1064 = vmatpush.msra.mxu0 %v663_v18  ;;  %1083 = vmatpush.msra.mxu1 %v731_v19  ;;  %v352_v15 = vld [vmem:[#allocation5 + $0x18] sm:$0xff] }
  0xe9   : > { %v727_v24 = vld [vmem:[#allocation5 + $0xbd0] sm:$0xff]  ;;  %1104 = vmatpush.msra.mxu2 %v408_v20  ;;  %1123 = vmatpush.msra.mxu3 %v476_v21  ;;  %v420_v16 = vld [vmem:[#allocation5 + $0x238] sm:$0xff] }
  0xea   : > { %v655_v28 = vld [vmem:[#allocation5 + $0x990] sm:$0xff]  ;;  %1065 = vmatpush.msra.mxu0 %v659_v23  ;;  %1084 = vmatpush.msra.mxu1 %v727_v24  ;;  %v668_v17 = vld [vmem:[#allocation5 + $0x9f8] sm:$0xff] }
  0xeb   : > { %v723_v29 = vld [vmem:[#allocation5 + $0xbb0] sm:$0xff]  ;;  %1105 = vmatpush.msra.mxu2 %v404_v25  ;;  %1124 = vmatpush.msra.mxu3 %v472_v26  ;;  %v416_v19 = vld [vmem:[#allocation5 + $0x218] sm:$0xff] }
  0xec   : > { %v651_v32 = vld [vmem:[#allocation5 + $0x970] sm:$0xff]  ;;  %1066 = vmatpush.msra.mxu0 %v655_v28  ;;  %1085 = vmatpush.msra.mxu1 %v723_v29  ;;  %v536_v20 = vld [vmem:[#allocation5 + $0x5d8] sm:$0xff] }
  0xed   : > { %v719_v33 = vld [vmem:[#allocation5 + $0xb90] sm:$0xff]  ;;  %1106 = vmatpush.msra.mxu2 %v400_v30  ;;  %1125 = vmatpush.msra.mxu3 %v468_v31  ;;  %v664_v21 = vld [vmem:[#allocation5 + $0x9d8] sm:$0xff] }
  0xee   : > { %v647_v36 = vld [vmem:[#allocation5 + $0x950] sm:$0xff]  ;;  %1067 = vmatpush.msra.mxu0 %v651_v32  ;;  %1086 = vmatpush.msra.mxu1 %v719_v33  ;;  %v732_v23 = vld [vmem:[#allocation5 + $0xbf8] sm:$0xff] }
  0xef   : > { %v715_v37 = vld [vmem:[#allocation5 + $0xb70] sm:$0xff]  ;;  %1107 = vmatpush.msra.mxu2 %v396_v34  ;;  %1126 = vmatpush.msra.mxu3 %v464_v35  ;;  %v604_v24 = vld [vmem:[#allocation5 + $0x7f8] sm:$0xff] }
  0xf0   : > { %v643_v40 = vld [vmem:[#allocation5 + $0x930] sm:$0xff]  ;;  %1068 = vmatpush.msra.mxu0 %v647_v36  ;;  %1087 = vmatpush.msra.mxu1 %v715_v37  ;;  %v532_v25 = vld [vmem:[#allocation5 + $0x5b8] sm:$0xff] }
  0xf1   : > { %v711_v41 = vld [vmem:[#allocation5 + $0xb50] sm:$0xff]  ;;  %1108 = vmatpush.msra.mxu2 %v392_v38  ;;  %1127 = vmatpush.msra.mxu3 %v460_v39  ;;  %v660_v26 = vld [vmem:[#allocation5 + $0x9b8] sm:$0xff] }
  0xf2   : > { %v639_v44 = vld [vmem:[#allocation5 + $0x910] sm:$0xff]  ;;  %1069 = vmatpush.msra.mxu0 %v643_v40  ;;  %1088 = vmatpush.msra.mxu1 %v711_v41  ;;  %v728_v28 = vld [vmem:[#allocation5 + $0xbd8] sm:$0xff] }
  0xf3   : > { %v707_v45 = vld [vmem:[#allocation5 + $0xb30] sm:$0xff]  ;;  %1109 = vmatpush.msra.mxu2 %v388_v42  ;;  %1128 = vmatpush.msra.mxu3 %v456_v43  ;;  %v600_v29 = vld [vmem:[#allocation5 + $0x7d8] sm:$0xff] }
  0xf4   : > { %v635_v48 = vld [vmem:[#allocation5 + $0x8f0] sm:$0xff]  ;;  %1070 = vmatpush.msra.mxu0 %v639_v44  ;;  %1089 = vmatpush.msra.mxu1 %v707_v45  ;;  %v528_v30 = vld [vmem:[#allocation5 + $0x598] sm:$0xff] }
  0xf5   : > { %v703_v49 = vld [vmem:[#allocation5 + $0xb10] sm:$0xff]  ;;  %1110 = vmatpush.msra.mxu2 %v384_v46  ;;  %1129 = vmatpush.msra.mxu3 %v452_v47  ;;  %v656_v31 = vld [vmem:[#allocation5 + $0x998] sm:$0xff] }
  0xf6   : > { %v631_v52 = vld [vmem:[#allocation5 + $0x8d0] sm:$0xff]  ;;  %1071 = vmatpush.msra.mxu0 %v635_v48  ;;  %1090 = vmatpush.msra.mxu1 %v703_v49  ;;  %v724_v32 = vld [vmem:[#allocation5 + $0xbb8] sm:$0xff] }
  0xf7   : > { %v699_v53 = vld [vmem:[#allocation5 + $0xaf0] sm:$0xff]  ;;  %1111 = vmatpush.msra.mxu2 %v380_v50  ;;  %1130 = vmatpush.msra.mxu3 %v448_v51  ;;  %v596_v33 = vld [vmem:[#allocation5 + $0x7b8] sm:$0xff] }
  0xf8   : > { %v627_v56 = vld [vmem:[#allocation5 + $0x8b0] sm:$0xff]  ;;  %1072 = vmatpush.msra.mxu0 %v631_v52  ;;  %1091 = vmatpush.msra.mxu1 %v699_v53  ;;  %v524_v34 = vld [vmem:[#allocation5 + $0x578] sm:$0xff] }
  0xf9   : > { %v695_v57 = vld [vmem:[#allocation5 + $0xad0] sm:$0xff]  ;;  %1112 = vmatpush.msra.mxu2 %v376_v54  ;;  %1131 = vmatpush.msra.mxu3 %v444_v55  ;;  %v652_v35 = vld [vmem:[#allocation5 + $0x978] sm:$0xff]  ;;  %v2151_v54 = vld [vmem:[#allocation7] sm:$0xf] }
  0xfa   : > { %v623_v60 = vld [vmem:[#allocation5 + $0x890] sm:$0xff]  ;;  %1073 = vmatpush.msra.mxu0 %v627_v56  ;;  %1092 = vmatpush.msra.mxu1 %v695_v57  ;;  %v720_v36 = vld [vmem:[#allocation5 + $0xb98] sm:$0xff] }
  0xfb   : > { %v691_v61 = vld [vmem:[#allocation5 + $0xab0] sm:$0xff]  ;;  %1113 = vmatpush.msra.mxu2 %v372_v58  ;;  %1132 = vmatpush.msra.mxu3 %v440_v59  ;;  %v592_v37 = vld [vmem:[#allocation5 + $0x798] sm:$0xff] }
  0xfc   : > { %1039 = vmatmul.f32.vlgmr.msrb.gmra.mxu2 %v2119_v63  ;;  %1074 = vmatpush.msra.mxu0 %v623_v60  ;;  %v619_v2 = vld [vmem:[#allocation5 + $0x870] sm:$0xff]  ;;  %v520_v38 = vld [vmem:[#allocation5 + $0x558] sm:$0xff] }
  0xfd   : > { %1093 = vmatpush.msra.mxu1 %v691_v61  ;;  %1114 = vmatpush.msra.mxu2 %v368_v0  ;;  %v687_v3 = vld [vmem:[#allocation5 + $0xa90] sm:$0xff]  ;;  %v648_v39 = vld [vmem:[#allocation5 + $0x958] sm:$0xff]  ;;  %v735_v61 = vperm.slane %v2151_v54, 0 }
  0xfe   : > { %1133 = vmatpush.msra.mxu3 %v436_v1  ;;  %999 = vmatmul.f32.vlgmr.msrb.gmra.mxu0 %v2116_v62  ;;  %v615_v8 = vld [vmem:[#allocation5 + $0x850] sm:$0xff]  ;;  %v716_v40 = vld [vmem:[#allocation5 + $0xb78] sm:$0xff] }
  0xff   : > { %1059 = vmatmul.f32.vlgmr.msrb.gmra.mxu3 %v2127_v5  ;;  %1075 = vmatpush.msra.mxu0 %v619_v2  ;;  %v683_v9 = vld [vmem:[#allocation5 + $0xa70] sm:$0xff]  ;;  %v588_v41 = vld [vmem:[#allocation5 + $0x778] sm:$0xff] }
 0x100   : > { %1094 = vmatpush.msra.mxu1 %v687_v3  ;;  %1115 = vmatpush.msra.mxu2 %v364_v6  ;;  %v611_v63 = vld [vmem:[#allocation5 + $0x830] sm:$0xff]  ;;  %v516_v42 = vld [vmem:[#allocation5 + $0x538] sm:$0xff] }
 0x101   : > { %1134 = vmatpush.msra.mxu3 %v432_v7  ;;  %1019 = vmatmul.f32.vlgmr.msrb.gmra.mxu1 %v2124_v4  ;;  %v679_v12 = vld [vmem:[#allocation5 + $0xa50] sm:$0xff]  ;;  %v540_v4 = vld [vmem:[#allocation5 + $0x5f8] sm:$0xff] }
 0x102   : > { %1076 = vmatpush.msra.mxu0 %v615_v8  ;;  %1095 = vmatpush.msra.mxu1 %v683_v9  ;;  %v607_v62 = vld [vmem:[#allocation5 + $0x810] sm:$0xff]  ;;  %v644_v43 = vld [vmem:[#allocation5 + $0x938] sm:$0xff] }
 0x103   : > { %1116 = vmatpush.msra.mxu2 %v360_v10  ;;  %1135 = vmatpush.msra.mxu3 %v428_v11  ;;  %v675_v5 = vld [vmem:[#allocation5 + $0xa30] sm:$0xff]  ;;  %v712_v44 = vld [vmem:[#allocation5 + $0xb58] sm:$0xff] }
 0x104   : > { %1077 = vmatpush.msra.mxu0 %v611_v63  ;;  %1096 = vmatpush.msra.mxu1 %v679_v12  ;;  %v671_v18 = vld [vmem:[#allocation5 + $0xa10] sm:$0xff]  ;;  %v584_v45 = vld [vmem:[#allocation5 + $0x758] sm:$0xff] }
 0x105   : > { %1117 = vmatpush.msra.mxu2 %v356_v13  ;;  %1136 = vmatpush.msra.mxu3 %v424_v14  ;;  %v512_v46 = vld [vmem:[#allocation5 + $0x518] sm:$0xff]  ;;  %v1680_v12 = vld [vmem:[%s2101_s19] sm:$0xff] }
 0x106   : > { %1078 = vmatpush.msra.mxu0 %v607_v62  ;;  %1097 = vmatpush.msra.mxu1 %v675_v5  ;;  %v640_v47 = vld [vmem:[#allocation5 + $0x918] sm:$0xff] }
 0x107   : > { %1118 = vmatpush.msra.mxu2 %v352_v15  ;;  %1137 = vmatpush.msra.mxu3 %v420_v16  ;;  %v708_v48 = vld [vmem:[#allocation5 + $0xb38] sm:$0xff] }
 0x108   : > { %1079 = vmatmul.f32.vlgmr.msra.gmra.mxu0 %v2132_v22  ;;  %1098 = vmatpush.msra.mxu1 %v671_v18  ;;  %v580_v49 = vld [vmem:[#allocation5 + $0x738] sm:$0xff] }
 0x109   : > { %1183 = vmatpush.msrb.mxu2 %v668_v17  ;;  %1143 = vmatpush.msrb.mxu0 %v540_v4  ;;  %v508_v50 = vld [vmem:[#allocation5 + $0x4f8] sm:$0xff] }
 0x10a   : > { %1138 = vmatpush.msra.mxu3 %v416_v19  ;;  %1099 = vmatmul.f32.vlgmr.msra.gmra.mxu1 %v2135_v27  ;;  %v636_v51 = vld [vmem:[#allocation5 + $0x8f8] sm:$0xff] }
 0x10b   : > { %1144 = vmatpush.msrb.mxu0 %v536_v20  ;;  %1184 = vmatpush.msrb.mxu2 %v664_v21  ;;  %v704_v52 = vld [vmem:[#allocation5 + $0xb18] sm:$0xff] }
 0x10c   : > { %1203 = vmatpush.msrb.mxu3 %v732_v23  ;;  %1163 = vmatpush.msrb.mxu1 %v604_v24  ;;  %v576_v53 = vld [vmem:[#allocation5 + $0x718] sm:$0xff] }
 0x10d   : > { %1145 = vmatpush.msrb.mxu0 %v532_v25  ;;  %1185 = vmatpush.msrb.mxu2 %v660_v26  ;;  %v504_v55 = vld [vmem:[#allocation5 + $0x4d8] sm:$0xff] }
 0x10e   : > { %1204 = vmatpush.msrb.mxu3 %v728_v28  ;;  %1164 = vmatpush.msrb.mxu1 %v600_v29  ;;  %v632_v56 = vld [vmem:[#allocation5 + $0x8d8] sm:$0xff] }
 0x10f   : > { %1146 = vmatpush.msrb.mxu0 %v528_v30  ;;  %1186 = vmatpush.msrb.mxu2 %v656_v31  ;;  %v700_v57 = vld [vmem:[#allocation5 + $0xaf8] sm:$0xff] }
 0x110   : > { %1205 = vmatpush.msrb.mxu3 %v724_v32  ;;  %1165 = vmatpush.msrb.mxu1 %v596_v33  ;;  %v572_v58 = vld [vmem:[#allocation5 + $0x6f8] sm:$0xff] }
 0x111   : > { %1147 = vmatpush.msrb.mxu0 %v524_v34  ;;  %1187 = vmatpush.msrb.mxu2 %v652_v35  ;;  %v500_v59 = vld [vmem:[#allocation5 + $0x4b8] sm:$0xff] }
 0x112   : > { %1206 = vmatpush.msrb.mxu3 %v720_v36  ;;  %1166 = vmatpush.msrb.mxu1 %v592_v37  ;;  %v628_v60 = vld [vmem:[#allocation5 + $0x8b8] sm:$0xff] }
 0x113   : > { %1148 = vmatpush.msrb.mxu0 %v520_v38  ;;  %1188 = vmatpush.msrb.mxu2 %v648_v39  ;;  %v696_v0 = vld [vmem:[#allocation5 + $0xad8] sm:$0xff]  ;;  %v1682_v38 = vld [vmem:[%s2101_s19 + $0x10] sm:$0xff] }
 0x114   : > { %1207 = vmatpush.msrb.mxu3 %v716_v40  ;;  %1167 = vmatpush.msrb.mxu1 %v588_v41  ;;  %v568_v1 = vld [vmem:[#allocation5 + $0x6d8] sm:$0xff]  ;;  %v1244_v39 = vld [vmem:[#allocation8 + $0x68] sm:$0xff] }
 0x115   : > { %1149 = vmatpush.msrb.mxu0 %v516_v42  ;;  %1189 = vmatpush.msrb.mxu2 %v644_v43  ;;  %v496_v2 = vld [vmem:[#allocation5 + $0x498] sm:$0xff] }
 0x116   : > { %1208 = vmatpush.msrb.mxu3 %v712_v44  ;;  %1168 = vmatpush.msrb.mxu1 %v584_v45  ;;  %v624_v3 = vld [vmem:[#allocation5 + $0x898] sm:$0xff] }
 0x117   : > { %1150 = vmatpush.msrb.mxu0 %v512_v46  ;;  %1190 = vmatpush.msrb.mxu2 %v640_v47  ;;  %v692_v6 = vld [vmem:[#allocation5 + $0xab8] sm:$0xff] }
 0x118   : > { %1209 = vmatpush.msrb.mxu3 %v708_v48  ;;  %1169 = vmatpush.msrb.mxu1 %v580_v49  ;;  %v492_v8 = vld [vmem:[#allocation5 + $0x478] sm:$0xff]  ;;  %v1276_v49 = vld [vmem:[#allocation8 + $0x168] sm:$0xff] }
 0x119   : > { %1151 = vmatpush.msrb.mxu0 %v508_v50  ;;  %1191 = vmatpush.msrb.mxu2 %v636_v51  ;;  %v564_v9 = vld [vmem:[#allocation5 + $0x6b8] sm:$0xff]  ;;  %v1259_v50 = vld [vmem:[#allocation8 + $0xe0] sm:$0xff]  ;;  %v1240_v51 = vld [vmem:[#allocation8 + $0x48] sm:$0xff] }
 0x11a   : > { %1210 = vmatpush.msrb.mxu3 %v704_v52  ;;  %1170 = vmatpush.msrb.mxu1 %v576_v53  ;;  %v620_v11 = vld [vmem:[#allocation5 + $0x878] sm:$0xff]  ;;  %v1275_v52 = vld [vmem:[#allocation8 + $0x160] sm:$0xff] }
 0x11b   : > { %1152 = vmatpush.msrb.mxu0 %v504_v55  ;;  %1192 = vmatpush.msrb.mxu2 %v632_v56  ;;  %v688_v63 = vld [vmem:[#allocation5 + $0xa98] sm:$0xff]  ;;  %v1239_v55 = vld [vmem:[#allocation8 + $0x40] sm:$0xff] }
 0x11c   : > { %1211 = vmatpush.msrb.mxu3 %v700_v57  ;;  %1171 = vmatpush.msrb.mxu1 %v572_v58  ;;  %v488_v13 = vld [vmem:[#allocation5 + $0x458] sm:$0xff] }
 0x11d   : > { %1153 = vmatpush.msrb.mxu0 %v500_v59  ;;  %1193 = vmatpush.msrb.mxu2 %v628_v60  ;;  %v760_v7 = vpop.f32.mrf.mxu0  ;;  %v560_v62 = vld [vmem:[#allocation5 + $0x698] sm:$0xff]  ;;  %v1256_v60 = vld [vmem:[#allocation8 + $0xc8] sm:$0xff] }
 0x11e   : > { %1212 = vmatpush.msrb.mxu3 %v696_v0  ;;  %1172 = vmatpush.msrb.mxu1 %v568_v1  ;;  %v761_v10 = vadd.f32 %v760_v7, %v735_v61  ;;  %v616_v5 = vld [vmem:[#allocation5 + $0x858] sm:$0xff]  ;;  %v1272_v0 = vld [vmem:[#allocation8 + $0x148] sm:$0xff]  ;;  %v1255_v1 = vld [vmem:[#allocation8 + $0xc0] sm:$0xff] }
 0x11f   : > { %1154 = vmatpush.msrb.mxu0 %v496_v2  ;;  %1194 = vmatpush.msrb.mxu2 %v624_v3  ;;  %v684_v16 = vld [vmem:[#allocation5 + $0xa78] sm:$0xff]  ;;  %v1236_v2 = vld [vmem:[#allocation8 + $0x28] sm:$0xff]  ;;  %v736_v3 = vperm.slane %v2151_v54, 1 }
 0x120   : > { %1213 = vmatpush.msrb.mxu3 %v692_v6  ;;  %1119 = vmatmul.f32.vlgmr.msra.gmra.mxu2 %v1680_v12  ;;  %v780_v14 = vpop.f32.mrf.mxu1  ;;  %v484_v17 = vld [vmem:[#allocation5 + $0x438] sm:$0xff]  ;;  %v1271_v6 = vld [vmem:[#allocation8 + $0x140] sm:$0xff]  ;;  %v1252_v12 = vld [vmem:[#allocation8 + $0xa8] sm:$0xff] }
 0x121   : > { %1155 = vmatpush.msrb.mxu0 %v492_v8  ;;  %1173 = vmatpush.msrb.mxu1 %v564_v9  ;;  %v781_v15 = vadd.f32 %v780_v14, %v761_v10  ;;  %v1681_v4 = vld [vmem:[%s2101_s19 + $0x8] sm:$0xff]  ;;  %v1683_v43 = vld [vmem:[%s2101_s19 + $0x18] sm:$0xff] }
 0x122   : > { %1195 = vmatpush.msrb.mxu2 %v620_v11  ;;  %1214 = vmatpush.msrb.mxu3 %v688_v63  ;;  %v556_v18 = vld [vmem:[#allocation5 + $0x678] sm:$0xff]  ;;  %v1235_v8 = vld [vmem:[#allocation8 + $0x20] sm:$0xff] }
 0x123   : > { %1139 = vmatmul.f32.vlgmr.msra.gmra.mxu3 %v1681_v4  ;;  %1156 = vmatpush.msrb.mxu0 %v488_v13  ;;  %v612_v19 = vld [vmem:[#allocation5 + $0x838] sm:$0xff]  ;;  %v800_v20 = vpop.f32.mrf.mxu2 }
 0x124   : > { %1174 = vmatpush.msrb.mxu1 %v560_v62  ;;  %1196 = vmatpush.msrb.mxu2 %v616_v5  ;;  %v680_v21 = vld [vmem:[#allocation5 + $0xa58] sm:$0xff]  ;;  %v801_v24 = vadd.f32 %v800_v20, %v781_v15  ;;  %v1251_v5 = vld [vmem:[#allocation8 + $0xa0] sm:$0xff]  ;;  %v1232_v15 = vld [vmem:[#allocation8 + $0x8] sm:$0xff] }
 0x125   : > { %v480_v23 = vld [vmem:[#allocation5 + $0x418] sm:$0xff]  ;;  %1215 = vmatpush.msrb.mxu3 %v684_v16  ;;  %1157 = vmatpush.msrb.mxu0 %v484_v17 }
 0x126   : > { %v552_v25 = vld [vmem:[#allocation5 + $0x658] sm:$0xff]  ;;  %1175 = vmatpush.msrb.mxu1 %v556_v18  ;;  %1197 = vmatpush.msrb.mxu2 %v612_v19  ;;  %v820_v29 = vpop.f32.mrf.mxu3  ;;  %v1231_v18 = vld [vmem:[#allocation8] sm:$0xff] }
 0x127   : > { %v608_v26 = vld [vmem:[#allocation5 + $0x818] sm:$0xff]  ;;  %1216 = vmatpush.msrb.mxu3 %v680_v21  ;;  %1158 = vmatpush.msrb.mxu0 %v480_v23  ;;  %v821_v32 = vadd.f32 %v820_v29, %v801_v24  ;;  %v1247_v29 = vld [vmem:[#allocation8 + $0x80] sm:$0xff] }
 0x128   : > { %v676_v28 = vld [vmem:[#allocation5 + $0xa38] sm:$0xff]  ;;  %1176 = vmatpush.msrb.mxu1 %v552_v25  ;;  %1198 = vmatpush.msrb.mxu2 %v608_v26  ;;  %v1248_v25 = vld [vmem:[#allocation8 + $0x88] sm:$0xff] }
 0x129   : > { %v1246_v30 = vld [vmem:[#allocation8 + $0x78] sm:$0xff]  ;;  %1217 = vmatpush.msrb.mxu3 %v676_v28  ;;  %1199 = vmatmul.f32.vlgmr.msrb.gmra.mxu2 %v2132_v22  ;;  %v1245_v34 = vld [vmem:[#allocation8 + $0x70] sm:$0xff]  ;;  %v840_v35 = vpop.f32.mrf.mxu0  ;;  %v1243_v22 = vld [vmem:[#allocation8 + $0x60] sm:$0xff] }
 0x12a   : > { %v548_v31 = vld [vmem:[#allocation5 + $0x638] sm:$0xff]  ;;  %1299 = vmatpush.msra.mxu0 %v1246_v30  ;;  %v841_v37 = vadd.f32 %v840_v35, %v821_v32  ;;  %v1267_v35 = vld [vmem:[#allocation8 + $0x120] sm:$0xff] }
 0x12b   : > { %v672_v33 = vld [vmem:[#allocation5 + $0xa18] sm:$0xff]  ;;  %1177 = vmatpush.msrb.mxu1 %v548_v31  ;;  %1159 = vmatmul.f32.vlgmr.msrb.gmra.mxu0 %v1682_v38  ;;  %v860_v40 = vpop.f32.mrf.mxu1  ;;  %v1264_v38 = vld [vmem:[#allocation8 + $0x108] sm:$0xff] }
 0x12c   : > { %v544_v36 = vld [vmem:[#allocation5 + $0x618] sm:$0xff]  ;;  %1218 = vmatpush.msrb.mxu3 %v672_v33  ;;  %1300 = vmatpush.msra.mxu0 %v1245_v34  ;;  %v2160_v41 = vadd.f32 %v860_v40, %v841_v37  ;;  %v1268_v34 = vld [vmem:[#allocation8 + $0x128] sm:$0xff] }
 0x12d   : > { %1219 = vmatmul.f32.vlgmr.msrb.gmra.mxu3 %v2135_v27  ;;  %v1262_v42 = vld [vmem:[#allocation8 + $0xf8] sm:$0xff]  ;;  %1178 = vmatpush.msrb.mxu1 %v544_v36  ;;  %v1261_v44 = vld [vmem:[#allocation8 + $0xf0] sm:$0xff]  ;;  %v1260_v27 = vld [vmem:[#allocation8 + $0xe8] sm:$0xff] }
 0x12e   : > { %1179 = vmatmul.f32.vlgmr.msrb.gmra.mxu1 %v1683_v43  ;;  %1301 = vmatpush.msra.mxu0 %v1244_v39  ;;  %1223 = vst [vmem:[%s2163_s16] sm:$0xff] %v2160_v41  ;;  %v1242_v45 = vld [vmem:[#allocation8 + $0x58] sm:$0xff]  ;;  %v1277_v47 = vld [vmem:[#allocation8 + $0x170] sm:$0xff]  ;;  %v1227_v21 = vmax.f32 %v2160_v41, 0.0  ;;  %v1263_v39 = vld [vmem:[#allocation8 + $0x100] sm:$0xff] }
 0x12f   : > { %1319 = vmatpush.msra.mxu1 %v1262_v42  ;;  %v1278_v46 = vld [vmem:[#allocation8 + $0x178] sm:$0xff]  ;;  %v1241_v48 = vld [vmem:[#allocation8 + $0x50] sm:$0xff]  ;;  %v1292_v42 = vld [vmem:[#allocation8 + $0x1e8] sm:$0xff] }
 0x130   : > { %1302 = vmatpush.msra.mxu0 %v1243_v22  ;;  %1339 = vmatpush.msra.mxu2 %v1278_v46  ;;  %v1258_v53 = vld [vmem:[#allocation8 + $0xd8] sm:$0xff]  ;;  %v1257_v57 = vld [vmem:[#allocation8 + $0xd0] sm:$0xff]  ;;  %v1291_v22 = vld [vmem:[#allocation8 + $0x1e0] sm:$0xff]  ;;  %v737_v46 = vperm.slane %v2151_v54, 2 }
 0x131   : > { %1320 = vmatpush.msra.mxu1 %v1261_v44  ;;  %v1274_v56 = vld [vmem:[#allocation8 + $0x158] sm:$0xff]  ;;  %v1273_v59 = vld [vmem:[#allocation8 + $0x150] sm:$0xff] }
 0x132   : > { %1303 = vmatpush.msra.mxu0 %v1242_v45  ;;  %1340 = vmatpush.msra.mxu2 %v1277_v47  ;;  %v1238_v58 = vld [vmem:[#allocation8 + $0x38] sm:$0xff]  ;;  %v1237_v61 = vld [vmem:[#allocation8 + $0x30] sm:$0xff]  ;;  %v1288_v45 = vld [vmem:[#allocation8 + $0x1c8] sm:$0xff] }
 0x133   : > { %1321 = vmatpush.msra.mxu1 %v1260_v27  ;;  %v1254_v7 = vld [vmem:[#allocation8 + $0xb8] sm:$0xff]  ;;  %v1253_v10 = vld [vmem:[#allocation8 + $0xb0] sm:$0xff]  ;;  %v1287_v47 = vld [vmem:[#allocation8 + $0x1c0] sm:$0xff] }
 0x134   : > { %1304 = vmatpush.msra.mxu0 %v1241_v48  ;;  %1341 = vmatpush.msra.mxu2 %v1276_v49  ;;  %v1234_v11 = vld [vmem:[#allocation8 + $0x18] sm:$0xff]  ;;  %v1233_v13 = vld [vmem:[#allocation8 + $0x10] sm:$0xff] }
 0x135   : > { %1322 = vmatpush.msra.mxu1 %v1259_v50  ;;  %v1250_v4 = vld [vmem:[#allocation8 + $0x98] sm:$0xff]  ;;  %v1249_v20 = vld [vmem:[#allocation8 + $0x90] sm:$0xff] }
 0x136   : > { %1305 = vmatpush.msra.mxu0 %v1240_v51  ;;  %1342 = vmatpush.msra.mxu2 %v1275_v52  ;;  %v1270_v32 = vld [vmem:[#allocation8 + $0x138] sm:$0xff]  ;;  %v1269_v33 = vld [vmem:[#allocation8 + $0x130] sm:$0xff] }
 0x137   : > { %1323 = vmatpush.msra.mxu1 %v1258_v53  ;;  %v1266_v36 = vld [vmem:[#allocation8 + $0x118] sm:$0xff]  ;;  %v1265_v37 = vld [vmem:[#allocation8 + $0x110] sm:$0xff] }
 0x138   : > { %1306 = vmatpush.msra.mxu0 %v1239_v55  ;;  %1343 = vmatpush.msra.mxu2 %v1274_v56  ;;  %v1294_v40 = vld [vmem:[#allocation8 + $0x1f8] sm:$0xff]  ;;  %v1293_v41 = vld [vmem:[#allocation8 + $0x1f0] sm:$0xff] }
 0x139   : > { %1324 = vmatpush.msra.mxu1 %v1257_v57  ;;  %1359 = vmatpush.msra.mxu3 %v1294_v40  ;;  %v1290_v43 = vld [vmem:[#allocation8 + $0x1d8] sm:$0xff]  ;;  %v1289_v44 = vld [vmem:[#allocation8 + $0x1d0] sm:$0xff] }
 0x13a   : > { %1307 = vmatpush.msra.mxu0 %v1238_v58  ;;  %1344 = vmatpush.msra.mxu2 %v1273_v59  ;;  %v1286_v56 = vld [vmem:[#allocation8 + $0x1b8] sm:$0xff]  ;;  %v1285_v59 = vld [vmem:[#allocation8 + $0x1b0] sm:$0xff] }
 0x13b   : > { %1325 = vmatpush.msra.mxu1 %v1256_v60  ;;  %1360 = vmatpush.msra.mxu3 %v1293_v41 }
 0x13c   : > { %1308 = vmatpush.msra.mxu0 %v1237_v61  ;;  %1345 = vmatpush.msra.mxu2 %v1272_v0  ;;  %v1284_v0 = vld [vmem:[#allocation8 + $0x1a8] sm:$0xff] }
 0x13d   : > { %1326 = vmatpush.msra.mxu1 %v1255_v1  ;;  %1361 = vmatpush.msra.mxu3 %v1292_v42 }
 0x13e   : > { %1309 = vmatpush.msra.mxu0 %v1236_v2  ;;  %v880_v9 = vpop.f32.mrf.mxu2  ;;  %1346 = vmatpush.msra.mxu2 %v1271_v6  ;;  %v1283_v2 = vld [vmem:[#allocation8 + $0x1a0] sm:$0xff]  ;;  %v1281_v6 = vld [vmem:[#allocation8 + $0x190] sm:$0xff] }
 0x13f   : > { %v881_v63 = vadd.f32 %v880_v9, %v736_v3  ;;  %1327 = vmatpush.msra.mxu1 %v1254_v7  ;;  %1362 = vmatpush.msra.mxu3 %v1291_v22  ;;  %v1282_v3 = vld [vmem:[#allocation8 + $0x198] sm:$0xff]  ;;  %v1280_v7 = vld [vmem:[#allocation8 + $0x188] sm:$0xff]  ;;  %v738_v9 = vperm.slane %v2151_v54, 3 }
 0x140   : > { %1310 = vmatpush.msra.mxu0 %v1235_v8  ;;  %1347 = vmatpush.msra.mxu2 %v1270_v32  ;;  %v1279_v8 = vld [vmem:[#allocation8 + $0x180] sm:$0xff] }
 0x141   : > { %v900_v14 = vpop.f32.mrf.mxu3  ;;  %1328 = vmatpush.msra.mxu1 %v1253_v10  ;;  %1363 = vmatpush.msra.mxu3 %v1290_v43 }
 0x142   : > { %1311 = vmatpush.msra.mxu0 %v1234_v11  ;;  %v901_v62 = vadd.f32 %v900_v14, %v881_v63  ;;  %1348 = vmatpush.msra.mxu2 %v1269_v33 }
 0x143   : > { %v920_v16 = vpop.f32.mrf.mxu0  ;;  %1329 = vmatpush.msra.mxu1 %v1252_v12  ;;  %1364 = vmatpush.msra.mxu3 %v1289_v44 }
 0x144   : > { %1312 = vmatpush.msra.mxu0 %v1233_v13  ;;  %v921_v17 = vadd.f32 %v920_v16, %v901_v62  ;;  %1349 = vmatpush.msra.mxu2 %v1268_v34 }
 0x145   : > { %1330 = vmatpush.msra.mxu1 %v1251_v5  ;;  %1365 = vmatpush.msra.mxu3 %v1288_v45 }
 0x146   : > { %1313 = vmatpush.msra.mxu0 %v1232_v15  ;;  %v940_v19 = vpop.f32.mrf.mxu1  ;;  %1350 = vmatpush.msra.mxu2 %v1267_v35 }
 0x147   : > { %v941_v23 = vadd.f32 %v940_v19, %v921_v17  ;;  %v960_v24 = vpop.f32.mrf.mxu2  ;;  %1331 = vmatpush.msra.mxu1 %v1250_v4  ;;  %1366 = vmatpush.msra.mxu3 %v1287_v47 }
 0x148   : > { %1314 = vmatpush.msra.mxu0 %v1231_v18  ;;  %1351 = vmatpush.msra.mxu2 %v1266_v36 }
 0x149   : > { %1315 = vmatmul.f32.vlgmr.msra.gmra.mxu0 %v1227_v21  ;;  %v961_v26 = vadd.f32 %v960_v24, %v941_v23  ;;  %1332 = vmatpush.msra.mxu1 %v1249_v20 }
 0x14a   : > { %v980_v28 = vpop.f32.mrf.mxu3  ;;  %1352 = vmatpush.msra.mxu2 %v1265_v37  ;;  %1367 = vmatpush.msra.mxu3 %v1286_v56 }
 0x14b   : > { %v981_v30 = vadd.f32 %v980_v28, %v961_v26  ;;  %1333 = vmatpush.msra.mxu1 %v1248_v25 }
 0x14c   : > { %1353 = vmatpush.msra.mxu2 %v1264_v38  ;;  %1368 = vmatpush.msra.mxu3 %v1285_v59 }
 0x14d   : > { %1224 = vst [vmem:[%s2163_s16 + $0x8] sm:$0xff] %v981_v30  ;;  %v1228_v31 = vmax.f32 %v981_v30, 0.0  ;;  %1334 = vmatpush.msra.mxu1 %v1247_v29 }
 0x14e   : > { %1354 = vmatpush.msra.mxu2 %v1263_v39  ;;  %1369 = vmatpush.msra.mxu3 %v1284_v0 }
 0x14f   : > { %1335 = vmatmul.f32.vlgmr.msra.gmra.mxu1 %v1228_v31 }
 0x150   : > { %1370 = vmatpush.msra.mxu3 %v1283_v2 }
 0x152   : > { %1371 = vmatpush.msra.mxu3 %v1282_v3 }
 0x154   : > { %1372 = vmatpush.msra.mxu3 %v1281_v6 }
 0x156   : > { %1373 = vmatpush.msra.mxu3 %v1280_v7 }
 0x158   : > { %1374 = vmatpush.msra.mxu3 %v1279_v8 }
 0x17b   : > { %v1000_v27 = vpop.f32.mrf.mxu0 }
 0x17c   : > { %v1001_v48 = vadd.f32 %v1000_v27, %v737_v46 }
 0x17e   : > { %v1020_v49 = vpop.f32.mrf.mxu1 }
 0x17f   : > { %v1021_v50 = vadd.f32 %v1020_v49, %v1001_v48  ;;  %v1040_v51 = vpop.f32.mrf.mxu2 }
 0x181   : > { %v1041_v52 = vadd.f32 %v1040_v51, %v1021_v50 }
 0x182   : > { %v1060_v53 = vpop.f32.mrf.mxu3 }
 0x183   : > { %v1061_v55 = vadd.f32 %v1060_v53, %v1041_v52 }
 0x185   : > { %v1080_v57 = vpop.f32.mrf.mxu0 }
 0x186   : > { %v1081_v58 = vadd.f32 %v1080_v57, %v1061_v55 }
 0x187   : > { %v1100_v60 = vpop.f32.mrf.mxu1 }
 0x188   : > { %v1101_v61 = vadd.f32 %v1100_v60, %v1081_v58 }
 0x18a   : > { %1225 = vst [vmem:[%s2163_s16 + $0x10] sm:$0xff] %v1101_v61  ;;  %v1229_v1 = vmax.f32 %v1101_v61, 0.0 }
 0x18c   : > { %1355 = vmatmul.f32.vlgmr.msra.gmra.mxu2 %v1229_v1 }
 0x1a3   : > { %v1120_v10 = vpop.f32.mrf.mxu2 }
 0x1a4   : > { %v1121_v11 = vadd.f32 %v1120_v10, %v738_v9 }
 0x1a6   : > { %v1140_v63 = vpop.f32.mrf.mxu3 }
 0x1a7   : > { %v1141_v12 = vadd.f32 %v1140_v63, %v1121_v11 }
 0x1a8   : > { %v1160_v13 = vpop.f32.mrf.mxu0 }
 0x1a9   : > { %v1161_v14 = vadd.f32 %v1160_v13, %v1141_v12 }
 0x1ab   : > { %v1180_v62 = vpop.f32.mrf.mxu1 }
 0x1ac   : > { %v1181_v5 = vadd.f32 %v1180_v62, %v1161_v14  ;;  %v1200_v15 = vpop.f32.mrf.mxu2 }
 0x1ae   : > { %v1201_v16 = vadd.f32 %v1200_v15, %v1181_v5 }
 0x1b0   : > { %v1220_v17 = vpop.f32.mrf.mxu3 }
 0x1b1   : > { %v1221_v4 = vadd.f32 %v1220_v17, %v1201_v16 }
 0x1b3   : > { %1226 = vst [vmem:[%s2163_s16 + $0x18] sm:$0xff] %v1221_v4  ;;  %v1230_v18 = vmax.f32 %v1221_v4, 0.0 }
 0x1b5   : > { %1375 = vmatmul.f32.vlgmr.msra.gmra.mxu3 %v1230_v18 }
 0x1b6   : > { %1861 = shalt.err (!%p1858_p9)
}
 0x1b7   : > { %1602 = dma.vmem_to_hbm [thread:$0]  (%p2068_p4), %s1414_s9, 512, %s1416_s10, %s1386_s13   ;;  %v1679_v54 = vld [vmem:[#allocation10] ss:$0 sm:$0xff] }
 0x1b8   : > { %s1570_s29 = sshll.u32 %s2097_s11, 3  ;;  %s1574_s16 = sshll.u32 %s2009_s28, 3 }
 0x1b9   : > { %s1396_s7 = scalar_lea.hbm %s2229_s5, %s1574_s16  ;;  %s335_s8 = scalar_lea.vmem [#allocation11], %s1570_s29 }
 0x1ba   : > { %s1398_s14 = sshll.u32 %s335_s8, 4  ;;  %s1400_s26 = sshll.u32 %s1396_s7, 4  ;;  %s1399_s14 = int_to_ptr.vmem [resolvable:$true] %s1398_s14  ;;  %s1401_s26 = int_to_ptr.hbm [resolvable:$true] %s1400_s26 }
 0x1bb   : > { %s1381_s9 = scalar_lea.sflag [#allocation4], %s2097_s11  ;;  %s1876_s28 = sshra.s32 %s1401_s26, 4  ;;  %s1877_s28 = int_to_ptr.hbm [resolvable:$true] %s1876_s28 }
 0x1bc   : > { %s1878_s10 = scalar_lea.hbm %s1877_s28, 8  ;;  %s1882_s20 = scalar_lea.hbm %s2229_s5, 16 }
 0x1bd   : > { %p1879_p10 = scmp.ne.s32.totalorder %s1877_s28, %s1878_s10  ;;  %p1883_p0 = scmp.lt.s32.totalorder %s1877_s28, %s2229_s5 }
 0x1be   : > { %p1884_p2 = scmp.lt.s32.totalorder %s1882_s20, %s1878_s10 }
 0x1bf   : > { %p1880_p11 = pnand %p1879_p10, %p2068_p4 }
 0x1c0   : > { %p1885_p1 = por %p1884_p2, %p1883_p0 }
 0x1c1   : > { %p1881_p13 = pneg %p1880_p11 }
 0x1c3   : > { %p1886_p3 = pnand %p1885_p1, %p1881_p13 }
 0x1c6   : > { %v1316_v19 = vpop.f32.mrf.mxu0 }
 0x1c7   : > { %v1317_v21 = vadd.f32 %v1679_v54, %v1316_v19 }
 0x1cc   : > { %v1336_v20 = vpop.f32.mrf.mxu1 }
 0x1cd   : > { %v1337_v24 = vadd.f32 %v1336_v20, %v1317_v21 }
 0x20f   : > { %v1356_v23 = vpop.f32.mrf.mxu2 }
 0x210   : > { %v1357_v25 = vadd.f32 %v1356_v23, %v1337_v24 }
 0x238   : > { %v1376_v26 = vpop.f32.mrf.mxu3 }
 0x239   : > { %v1377_v28 = vadd.f32 %v1376_v26, %v1357_v25 }
 0x23b   : > { %1379 = vst [vmem:[%s335_s8] sm:$0xff] %v1377_v28 }
 0x23c   : > { %1889 = shalt.err (!%p1886_p3)
}
 0x23d   : > { %1601 = dma.vmem_to_hbm [thread:$0]  (%p2068_p4), %s1399_s14, 128, %s1401_s26, %s1381_s9  }
 0x23e PF: > { %s1427_s11 = sand.u32 1, %s1928_s21   ;;  %p2241_p5 = scmp.ge.s32.totalorder %s1940_s24, 2 }
 0x23f   : > { %s1428_s19 = scalar_lea.sflag [#allocation4], %s1427_s11 }
 0x240   : > { %p1623_p12 = pnand %p2241_p5, %p2072_p6 }
 0x242   : > { %p1624_p7 = pneg %p1623_p12 }
 0x244   : > { %1919 = dma.done.wait (%p1624_p7), %s1428_s19, 128  }
 0x245   : > { %1921 = vsyncadd (%p1624_p7), %s1428_s19, 4294967168  ;;  %s1438_s29 = scalar_lea.sflag [#allocation13], %s1427_s11 }
 0x246   : > { %1923 = dma.done.wait (%p1624_p7), %s1438_s29, 512  }
 0x247   : > { %1925 = vsyncadd (%p1624_p7), %s1438_s29, 4294966784  ;;  %p25_p4 = scmp.ge.s32.totalorder %s2046_s12, 4   ;;  %s2242_s21 = smov %s1932_s22 }
 0x248   : > { %s2243_s22 = smov %s1936_s23  ;;  %s2244_s23 = smov %s2057_s15 }
 0x249   : > { %s2245_s24 = smov %s2046_s12  ;;  %27 = sbr.rel (!%p25_p4) target bundleno = 12 (0xc), region = 118 }
 0x24e   :  { %1444 = vsyncpa [#allocation3], 1 }
 0x24f   :  { %1446 = vsyncpa [#allocation3 + $0x1], 1 }
 0x250   :  { %1447 = vsyncpa [#allocation6], 1 }
 0x251   :  { %1448 = vsyncpa [#allocation9], 1 }
 0x252   :  { %1449 = vsyncpa [#allocation4], 1 }
 0x253   :  { %1451 = vsyncpa [#allocation4 + $0x1], 1 }
 0x254   :  { %1452 = vsyncpa [#allocation13], 1 }
 0x255   :  { %1454 = vsyncpa [#allocation13 + $0x1], 1 }

</bundles_post_ra>
